<compile_context>
chip_gen: v5e
topology: v5e:2x2
jax: 0.10.0
libtpu: 0.0.40
codegen_flags: <defaults>
</compile_context>

<pallas_src>
import functools

import jax
import jax.numpy as jnp
from jax.experimental import pallas as pl
from jax.experimental.pallas import tpu as pltpu

_VMEM_LIMIT_BYTES = 48 * 1024 * 1024


def _largest_divisor_leq(n, cap):
    cap = max(1, min(n, cap))
    for d in range(cap, 0, -1):
        if n % d == 0:
            return d
    return 1


# ----------------------------------------------------------------------------
# Conv3x3 (pad=1) + folded BatchNorm + ReLU.
# Grid = (N, H//th).  Per grid step the kernel reads th+2 padded rows of the
# (per-image resident, bf16) padded input; for each of the 3 kernel rows the
# three dx-shifted views are concatenated along channels -> (th*W, 3*Cin) and
# fed to a single MXU matmul against the (3*Cin, Cout) weight slab.
# f32 accumulation, f32 BN/ReLU epilogue, bf16 store.
# ----------------------------------------------------------------------------
def _conv_bn_relu_kernel(xp_ref, w_ref, scale_ref, shift_ref, o_ref, *, th, W):
    h = pl.program_id(1)
    Cin3 = w_ref.shape[1]          # 3 * Cin
    Cout = w_ref.shape[2]
    row0 = h * th

    acc = jnp.zeros((th * W, Cout), jnp.float32)
    for dy in range(3):
        # (th, W+2, Cin) slab of the padded image for this kernel-row offset.
        plane = xp_ref[0, pl.ds(row0 + dy, th), :, :]
        # Tap-merge along the contraction dim: (th, W, 3*Cin).
        xt = jnp.concatenate(
            [plane[:, 0:W, :], plane[:, 1:W + 1, :], plane[:, 2:W + 2, :]],
            axis=-1).reshape(th * W, Cin3)
        acc = acc + jnp.dot(xt, w_ref[dy], preferred_element_type=jnp.float32)

    # BN (folded) + ReLU epilogue in f32, store bf16.
    y = acc * scale_ref[...] + shift_ref[...]
    o_ref[0] = jnp.maximum(y, 0.0).astype(o_ref.dtype)


def conv3x3_bn_relu(x_nhwc, w3_bf16, scale, shift):
    N, H, W, Cin = x_nhwc.shape
    Cout = w3_bf16.shape[-1]

    # Single 1x padded copy in bf16 (no im2col stack in HBM, half-width traffic).
    xp = jnp.pad(x_nhwc.astype(jnp.bfloat16), ((0, 0), (1, 1), (1, 1), (0, 0)))

    # Row-band tile: ~2K output pixels per step (bounded VMEM, good MXU M).
    th = _largest_divisor_leq(H, max(1, 2048 // max(W, 1)))
    m_tile = th * W
    n_h = H // th

    out = pl.pallas_call(
        functools.partial(_conv_bn_relu_kernel, th=th, W=W),
        out_shape=jax.ShapeDtypeStruct((N, H * W, Cout), jnp.bfloat16),
        grid_spec=pltpu.PrefetchScalarGridSpec(
            num_scalar_prefetch=0,
            grid=(N, n_h),
            in_specs=[
                # Padded image stays resident across the h axis (re-DMA per n only).
                pl.BlockSpec((1, H + 2, W + 2, Cin), lambda n, h: (n, 0, 0, 0)),
                pl.BlockSpec((3, 3 * Cin, Cout), lambda n, h: (0, 0, 0)),
                pl.BlockSpec((1, Cout), lambda n, h: (0, 0)),
                pl.BlockSpec((1, Cout), lambda n, h: (0, 0)),
            ],
            out_specs=pl.BlockSpec((1, m_tile, Cout), lambda n, h: (n, h, 0)),
        ),
        compiler_params=pltpu.CompilerParams(
            dimension_semantics=("parallel", "parallel"),
            vmem_limit_bytes=_VMEM_LIMIT_BYTES),
    )(xp, w3_bf16, scale, shift)
    return out.reshape(N, H, W, Cout)


# ----------------------------------------------------------------------------
# MaxPool 2x2 stride 2.
# Input reshaped (pure row-major view) to (N*Ho, 2, Wo, 2*C) so the last two
# block dims are (Wo, 2*C): no size-2 sublane dim, lane-dense loads/stores.
# Row max = reduce over axis 1; column max = max of the two C-wide lane halves.
# ----------------------------------------------------------------------------
def _maxpool2x2_kernel(x_ref, o_ref):
    C = o_ref.shape[-1]
    x = x_ref[...]                                   # (tr, 2, Wo, 2*C)
    y = jnp.max(x, axis=1)                           # (tr, Wo, 2*C)
    o_ref[...] = jnp.maximum(y[..., :C], y[..., C:])  # (tr, Wo, C)


def maxpool2x2(x_nhwc):
    N, H, W, C = x_nhwc.shape
    assert H % 2 == 0 and W % 2 == 0, "maxpool2x2 expects even spatial dims"
    Ho, Wo = H // 2, W // 2
    R = N * Ho
    xr = x_nhwc.reshape(R, 2, Wo, 2 * C)             # pure reshape (row-major)

    # Target ~2 MiB input blocks (pooling is pure HBM-bandwidth work).
    bytes_per_row = 2 * Wo * 2 * C * x_nhwc.dtype.itemsize
    tr = _largest_divisor_leq(R, min(256, max(1, (2 << 20) // max(1, bytes_per_row))))

    out = pl.pallas_call(
        _maxpool2x2_kernel,
        out_shape=jax.ShapeDtypeStruct((R, Wo, C), x_nhwc.dtype),
        grid_spec=pltpu.PrefetchScalarGridSpec(
            num_scalar_prefetch=0,
            grid=(R // tr,),
            in_specs=[pl.BlockSpec((tr, 2, Wo, 2 * C),
                                   lambda i: (i, 0, 0, 0))],
            out_specs=pl.BlockSpec((tr, Wo, C), lambda i: (i, 0, 0)),
        ),
        compiler_params=pltpu.CompilerParams(dimension_semantics=("parallel",)),
    )(xr)
    return out.reshape(N, Ho, Wo, C)


# ----------------------------------------------------------------------------
# AdaptiveAvgPool2d((1,1)) + flatten -> global mean over H, W.
# Several images per grid step to amortize per-step overhead.
# ----------------------------------------------------------------------------
def _global_avgpool_kernel(x_ref, o_ref):
    x = x_ref[...].astype(jnp.float32)               # (bn, H, W, C)
    s = jnp.sum(x, axis=2)                           # (bn, H, C)
    s = jnp.sum(s, axis=1, keepdims=True)            # (bn, 1, C)
    inv = 1.0 / float(x_ref.shape[1] * x_ref.shape[2])
    o_ref[...] = (s * inv).astype(o_ref.dtype)


def global_avgpool(x_nhwc):
    N, H, W, C = x_nhwc.shape
    per_img = H * W * C * x_nhwc.dtype.itemsize
    bn = _largest_divisor_leq(N, min(8, max(1, (4 << 20) // max(1, per_img))))
    out = pl.pallas_call(
        _global_avgpool_kernel,
        out_shape=jax.ShapeDtypeStruct((N, 1, C), jnp.float32),
        grid_spec=pltpu.PrefetchScalarGridSpec(
            num_scalar_prefetch=0,
            grid=(N // bn,),
            in_specs=[pl.BlockSpec((bn, H, W, C), lambda i: (i, 0, 0, 0))],
            out_specs=pl.BlockSpec((bn, 1, C), lambda i: (i, 0, 0)),
        ),
        compiler_params=pltpu.CompilerParams(dimension_semantics=("parallel",)),
    )(x_nhwc)
    return out.reshape(N, C)


# ----------------------------------------------------------------------------
# Linear (+ optional fused ReLU).  bf16 weights, f32 accumulation directly in
# the output block (no scratch), Buffered(3) weight DMAs, lane-dense output
# tiles (caller pads Nout to a multiple of 128).
# ----------------------------------------------------------------------------
def _linear_kernel(x_ref, w_ref, b_ref, o_ref, *, relu):
    k = pl.program_id(1)

    @pl.when(k == 0)
    def _():
        o_ref[...] = jnp.zeros_like(o_ref)

    o_ref[...] += jnp.dot(x_ref[...].astype(jnp.bfloat16), w_ref[...],
                          preferred_element_type=jnp.float32)

    @pl.when(k == pl.num_programs(1) - 1)
    def _():
        y = o_ref[...] + b_ref[...]
        if relu:
            y = jnp.maximum(y, 0.0)
        o_ref[...] = y


def linear(x, w_bf16, b, relu=False, tk=512, tn=1024):
    M, K = x.shape
    _, Nout = w_bf16.shape
    tk = _largest_divisor_leq(K, min(tk, K))
    tn = _largest_divisor_leq(Nout, min(tn, Nout))
    return pl.pallas_call(
        functools.partial(_linear_kernel, relu=relu),
        out_shape=jax.ShapeDtypeStruct((M, Nout), jnp.float32),
        grid_spec=pltpu.PrefetchScalarGridSpec(
            num_scalar_prefetch=0,
            grid=(Nout // tn, K // tk),
            in_specs=[
                pl.BlockSpec((M, tk), lambda j, k: (0, k)),
                pl.BlockSpec((tk, tn), lambda j, k: (k, j),
                             pipeline_mode=pl.Buffered(3)),
                pl.BlockSpec((1, tn), lambda j, k: (0, j)),
            ],
            out_specs=pl.BlockSpec((M, tn), lambda j, k: (0, j)),
        ),
        compiler_params=pltpu.CompilerParams(
            dimension_semantics=("parallel", "arbitrary"),
            vmem_limit_bytes=_VMEM_LIMIT_BYTES),
    )(x, w_bf16, b)


# ----------------------------------------------------------------------------
# VGG module (eval-mode forward), deterministic synthetic parameters.
# ----------------------------------------------------------------------------
class VGGPallas:
    def __init__(self, layer_spec, num_classes=1000, key=None, eps=1e-5):
        if key is None:
            key = jax.random.PRNGKey(0)
        keys = list(jax.random.split(key, 4 * len(layer_spec) + 8))
        ki = 0
        self.num_classes = num_classes

        self.feature_layers = []
        in_c = 3
        for l in layer_spec:
            if l == 'pool':
                self.feature_layers.append(('pool', None))
            else:
                fan_out = 9 * l  # kaiming_normal fan_out / relu
                w = jax.random.normal(keys[ki], (3, 3, in_c, l),
                                      jnp.float32) * (2.0 / fan_out) ** 0.5
                ki += 1
                conv_b = jnp.zeros((l,), jnp.float32)
                gamma = jnp.ones((l,), jnp.float32)
                beta = jnp.zeros((l,), jnp.float32)
                mean = 0.01 * jax.random.normal(keys[ki], (l,), jnp.float32)
                ki += 1
                var = 1.0 + 0.1 * jax.random.uniform(keys[ki], (l,),
                                                     jnp.float32)
                ki += 1
                # Fold BN (eval mode) + conv bias into a single scale/shift.
                scale = gamma / jnp.sqrt(var + eps)
                shift = beta + (conv_b - mean) * scale
                # Weights laid out as (ky, kx*Cin, Cout) bf16 so each kernel-row
                # becomes one (3*Cin, Cout) MXU operand (tap-merged K).
                w3 = w.reshape(3, 3 * in_c, l).astype(jnp.bfloat16)
                self.feature_layers.append(
                    ('conv', (w3,
                              scale.reshape(1, l).astype(jnp.float32),
                              shift.reshape(1, l).astype(jnp.float32))))
                in_c = l

        # classifier: Linear(512,4096) -> ReLU -> Dropout -> Linear(4096,4096)
        #             -> ReLU -> Dropout -> Linear(4096,num_classes)
        def lin_init(k, fan_in, fan_out, pad_to=128):
            fan_out_p = ((fan_out + pad_to - 1) // pad_to) * pad_to
            w = 0.01 * jax.random.normal(k, (fan_in, fan_out), jnp.float32)
            w = jnp.pad(w, ((0, 0), (0, fan_out_p - fan_out))).astype(jnp.bfloat16)
            b = jnp.zeros((1, fan_out_p), jnp.float32)
            return w, b

        self.fc1 = lin_init(keys[ki], 512, 4096); ki += 1
        self.fc2 = lin_init(keys[ki], 4096, 4096); ki += 1
        self.fc3 = lin_init(keys[ki], 4096, num_classes); ki += 1

    def __call__(self, x_nchw):
        # NCHW (PyTorch) -> NHWC, bf16 activations through the feature stack.
        x = jnp.transpose(x_nchw, (0, 2, 3, 1)).astype(jnp.bfloat16)
        for kind, p in self.feature_layers:
            if kind == 'pool':
                x = maxpool2x2(x)
            else:
                x = conv3x3_bn_relu(x, *p)
        x = global_avgpool(x)                        # (N, 512) f32
        x = linear(x, *self.fc1, relu=True)          # Dropout = identity (eval)
        x = linear(x, *self.fc2, relu=True)          # Dropout = identity (eval)
        x = linear(x, *self.fc3, relu=False)
        return x[:, :self.num_classes]               # drop lane padding of fc3


if __name__ == "__main__":
    # Small VGG-style spec; last conv must produce 512 channels because the
    # module hard-codes Linear(512 * 1 * 1, 4096).
    layer_spec = [8, 'pool', 16, 'pool', 512]
    root = jax.random.PRNGKey(0)
    k_model, k_x = jax.random.split(root)
    model = VGGPallas(layer_spec, num_classes=10, key=k_model)

    x = jax.random.normal(k_x, (2, 3, 16, 16), jnp.float32)
    out = model(x)
    out = jax.block_until_ready(out)
    assert out.shape == (2, 10), out.shape
    assert jnp.all(jnp.isfinite(out))
    print("KERNEL_OK")
</pallas_src>

<mosaic_0001>
module attributes {stable_mosaic.version = 11 : i64} {
  func.func @_conv_bn_relu_kernel(%arg0: i32, %arg1: i32, %arg2: memref<1x18x18x3xbf16, #tpu.memory_space<vmem>>, %arg3: memref<3x9x8xbf16, #tpu.memory_space<vmem>>, %arg4: memref<1x8xf32, #tpu.memory_space<vmem>>, %arg5: memref<1x8xf32, #tpu.memory_space<vmem>>, %arg6: memref<1x256x8xbf16, #tpu.memory_space<vmem>>) attributes {dimension_semantics = [#tpu.dimension_semantics<parallel>, #tpu.dimension_semantics<parallel>], iteration_bounds = array<i64: 2, 1>, scalar_prefetch = 0 : i64, scratch_operands = 0 : i64, tpu.core_type = #tpu.core_type<tc>, window_params = [{transform_indices = @transform_0, window_bounds = array<i64: 1, 18, 18, 3>}, {pipeline_mode = #tpu.pipeline_mode<synchronous>, transform_indices = @transform_1, window_bounds = array<i64: 3, 9, 8>}, {pipeline_mode = #tpu.pipeline_mode<synchronous>, transform_indices = @transform_2, window_bounds = array<i64: 1, 8>}, {pipeline_mode = #tpu.pipeline_mode<synchronous>, transform_indices = @transform_3, window_bounds = array<i64: 1, 8>}, {transform_indices = @transform_4, window_bounds = array<i64: 1, 256, 8>}]} {
    %c16_i32 = arith.constant 16 : i32
    %0 = arith.muli %arg1, %c16_i32 : i32
    %cst = arith.constant 0.000000e+00 : f32
    %1 = vector.broadcast %cst : f32 to vector<256x8xf32>
    %c0_i32 = arith.constant 0 : i32
    %2 = arith.addi %0, %c0_i32 : i32
    %c0 = arith.constant 0 : index
    %3 = arith.index_cast %2 : i32 to index
    %c0_0 = arith.constant 0 : index
    %c0_1 = arith.constant 0 : index
    %4 = vector.load %arg2[%c0, %3, %c0_0, %c0_1] : memref<1x18x18x3xbf16, #tpu.memory_space<vmem>>, vector<1x16x18x3xbf16>
    %5 = vector.shape_cast %4 : vector<1x16x18x3xbf16> to vector<16x18x3xbf16>
    %6 = vector.extract_strided_slice %5 {offsets = [0, 0, 0], sizes = [16, 16, 3], strides = [1, 1, 1]} : vector<16x18x3xbf16> to vector<16x16x3xbf16>
    %7 = vector.extract_strided_slice %5 {offsets = [0, 1, 0], sizes = [16, 16, 3], strides = [1, 1, 1]} : vector<16x18x3xbf16> to vector<16x16x3xbf16>
    %8 = vector.extract_strided_slice %5 {offsets = [0, 2, 0], sizes = [16, 16, 3], strides = [1, 1, 1]} : vector<16x18x3xbf16> to vector<16x16x3xbf16>
    %9 = tpu.concatenate %6, %7, %8 in 2 : vector<16x16x3xbf16>, vector<16x16x3xbf16>, vector<16x16x3xbf16> -> vector<16x16x9xbf16>
    %10 = vector.shape_cast %9 : vector<16x16x9xbf16> to vector<256x9xbf16>
    %c0_2 = arith.constant 0 : index
    %c0_3 = arith.constant 0 : index
    %c0_4 = arith.constant 0 : index
    %11 = vector.load %arg3[%c0_2, %c0_3, %c0_4] : memref<3x9x8xbf16, #tpu.memory_space<vmem>>, vector<1x9x8xbf16>
    %12 = vector.shape_cast %11 : vector<1x9x8xbf16> to vector<9x8xbf16>
    %cst_5 = arith.constant dense<0.000000e+00> : vector<256x8xf32>
    %13 = tpu.matmul %10, %12, %cst_5 {dimension_numbers = #tpu.dot_dimension_numbers<[1], [0], [0], [1], [0, 0, 1, 1], [], []>} : vector<256x9xbf16>, vector<9x8xbf16>, vector<256x8xf32> -> vector<256x8xf32>
    %14 = arith.addf %1, %13 : vector<256x8xf32>
    %c1_i32 = arith.constant 1 : i32
    %15 = arith.addi %0, %c1_i32 : i32
    %c0_6 = arith.constant 0 : index
    %16 = arith.index_cast %15 : i32 to index
    %c0_7 = arith.constant 0 : index
    %c0_8 = arith.constant 0 : index
    %17 = vector.load %arg2[%c0_6, %16, %c0_7, %c0_8] : memref<1x18x18x3xbf16, #tpu.memory_space<vmem>>, vector<1x16x18x3xbf16>
    %18 = vector.shape_cast %17 : vector<1x16x18x3xbf16> to vector<16x18x3xbf16>
    %19 = vector.extract_strided_slice %18 {offsets = [0, 0, 0], sizes = [16, 16, 3], strides = [1, 1, 1]} : vector<16x18x3xbf16> to vector<16x16x3xbf16>
    %20 = vector.extract_strided_slice %18 {offsets = [0, 1, 0], sizes = [16, 16, 3], strides = [1, 1, 1]} : vector<16x18x3xbf16> to vector<16x16x3xbf16>
    %21 = vector.extract_strided_slice %18 {offsets = [0, 2, 0], sizes = [16, 16, 3], strides = [1, 1, 1]} : vector<16x18x3xbf16> to vector<16x16x3xbf16>
    %22 = tpu.concatenate %19, %20, %21 in 2 : vector<16x16x3xbf16>, vector<16x16x3xbf16>, vector<16x16x3xbf16> -> vector<16x16x9xbf16>
    %23 = vector.shape_cast %22 : vector<16x16x9xbf16> to vector<256x9xbf16>
    %c1 = arith.constant 1 : index
    %c0_9 = arith.constant 0 : index
    %c0_10 = arith.constant 0 : index
    %24 = vector.load %arg3[%c1, %c0_9, %c0_10] : memref<3x9x8xbf16, #tpu.memory_space<vmem>>, vector<1x9x8xbf16>
    %25 = vector.shape_cast %24 : vector<1x9x8xbf16> to vector<9x8xbf16>
    %cst_11 = arith.constant dense<0.000000e+00> : vector<256x8xf32>
    %26 = tpu.matmul %23, %25, %cst_11 {dimension_numbers = #tpu.dot_dimension_numbers<[1], [0], [0], [1], [0, 0, 1, 1], [], []>} : vector<256x9xbf16>, vector<9x8xbf16>, vector<256x8xf32> -> vector<256x8xf32>
    %27 = arith.addf %14, %26 : vector<256x8xf32>
    %c2_i32 = arith.constant 2 : i32
    %28 = arith.addi %0, %c2_i32 : i32
    %c0_12 = arith.constant 0 : index
    %29 = arith.index_cast %28 : i32 to index
    %c0_13 = arith.constant 0 : index
    %c0_14 = arith.constant 0 : index
    %30 = vector.load %arg2[%c0_12, %29, %c0_13, %c0_14] : memref<1x18x18x3xbf16, #tpu.memory_space<vmem>>, vector<1x16x18x3xbf16>
    %31 = vector.shape_cast %30 : vector<1x16x18x3xbf16> to vector<16x18x3xbf16>
    %32 = vector.extract_strided_slice %31 {offsets = [0, 0, 0], sizes = [16, 16, 3], strides = [1, 1, 1]} : vector<16x18x3xbf16> to vector<16x16x3xbf16>
    %33 = vector.extract_strided_slice %31 {offsets = [0, 1, 0], sizes = [16, 16, 3], strides = [1, 1, 1]} : vector<16x18x3xbf16> to vector<16x16x3xbf16>
    %34 = vector.extract_strided_slice %31 {offsets = [0, 2, 0], sizes = [16, 16, 3], strides = [1, 1, 1]} : vector<16x18x3xbf16> to vector<16x16x3xbf16>
    %35 = tpu.concatenate %32, %33, %34 in 2 : vector<16x16x3xbf16>, vector<16x16x3xbf16>, vector<16x16x3xbf16> -> vector<16x16x9xbf16>
    %36 = vector.shape_cast %35 : vector<16x16x9xbf16> to vector<256x9xbf16>
    %c2 = arith.constant 2 : index
    %c0_15 = arith.constant 0 : index
    %c0_16 = arith.constant 0 : index
    %37 = vector.load %arg3[%c2, %c0_15, %c0_16] : memref<3x9x8xbf16, #tpu.memory_space<vmem>>, vector<1x9x8xbf16>
    %38 = vector.shape_cast %37 : vector<1x9x8xbf16> to vector<9x8xbf16>
    %cst_17 = arith.constant dense<0.000000e+00> : vector<256x8xf32>
    %39 = tpu.matmul %36, %38, %cst_17 {dimension_numbers = #tpu.dot_dimension_numbers<[1], [0], [0], [1], [0, 0, 1, 1], [], []>} : vector<256x9xbf16>, vector<9x8xbf16>, vector<256x8xf32> -> vector<256x8xf32>
    %40 = arith.addf %27, %39 : vector<256x8xf32>
    %c0_18 = arith.constant 0 : index
    %c0_19 = arith.constant 0 : index
    %41 = vector.load %arg4[%c0_18, %c0_19] : memref<1x8xf32, #tpu.memory_space<vmem>>, vector<1x8xf32>
    %42 = vector.broadcast %41 : vector<1x8xf32> to vector<256x8xf32>
    %43 = arith.mulf %40, %42 : vector<256x8xf32>
    %c0_20 = arith.constant 0 : index
    %c0_21 = arith.constant 0 : index
    %44 = vector.load %arg5[%c0_20, %c0_21] : memref<1x8xf32, #tpu.memory_space<vmem>>, vector<1x8xf32>
    %45 = vector.broadcast %44 : vector<1x8xf32> to vector<256x8xf32>
    %46 = arith.addf %43, %45 : vector<256x8xf32>
    %cst_22 = arith.constant 0.000000e+00 : f32
    %47 = vector.broadcast %cst_22 : f32 to vector<256x8xf32>
    %48 = arith.maximumf %46, %47 : vector<256x8xf32>
    %49 = arith.truncf %48 : vector<256x8xf32> to vector<256x8xbf16>
    %c0_23 = arith.constant 0 : index
    %c0_24 = arith.constant 0 : index
    %c0_25 = arith.constant 0 : index
    %50 = vector.load %arg6[%c0_23, %c0_24, %c0_25] : memref<1x256x8xbf16, #tpu.memory_space<vmem>>, vector<1x256x8xbf16>
    %51 = vector.shape_cast %50 : vector<1x256x8xbf16> to vector<256x8xbf16>
    %52 = vector.shape_cast %49 : vector<256x8xbf16> to vector<1x256x8xbf16>
    tpu.vector_store %arg6[%c0_23, %c0_24, %c0_25], %52 {strides = array<i32>} : memref<1x256x8xbf16, #tpu.memory_space<vmem>>, vector<1x256x8xbf16>,
    return
  }
  func.func @transform_0(%arg0: i32, %arg1: i32) -> (i32, i32, i32, i32) {
    %c0_i32 = arith.constant 0 : i32
    %c0_i32_0 = arith.constant 0 : i32
    %c0_i32_1 = arith.constant 0 : i32
    %c0_i32_2 = arith.constant 0 : i32
    return %arg0, %c0_i32, %c0_i32_0, %c0_i32_1 : i32, i32, i32, i32
  }
  func.func @transform_1(%arg0: i32, %arg1: i32) -> (i32, i32, i32) {
    %c0_i32 = arith.constant 0 : i32
    %c0_i32_0 = arith.constant 0 : i32
    %c0_i32_1 = arith.constant 0 : i32
    %c0_i32_2 = arith.constant 0 : i32
    return %c0_i32, %c0_i32_0, %c0_i32_1 : i32, i32, i32
  }
  func.func @transform_2(%arg0: i32, %arg1: i32) -> (i32, i32) {
    %c0_i32 = arith.constant 0 : i32
    %c0_i32_0 = arith.constant 0 : i32
    %c0_i32_1 = arith.constant 0 : i32
    return %c0_i32, %c0_i32_0 : i32, i32
  }
  func.func @transform_3(%arg0: i32, %arg1: i32) -> (i32, i32) {
    %c0_i32 = arith.constant 0 : i32
    %c0_i32_0 = arith.constant 0 : i32
    %c0_i32_1 = arith.constant 0 : i32
    return %c0_i32, %c0_i32_0 : i32, i32
  }
  func.func @transform_4(%arg0: i32, %arg1: i32) -> (i32, i32, i32) {
    %c0_i32 = arith.constant 0 : i32
    %c0_i32_0 = arith.constant 0 : i32
    return %arg0, %arg1, %c0_i32 : i32, i32, i32
  }
}

</mosaic_0001>

<bundles_post_ra>
// kernel: tpu_custom_call.1
= control target key start
LH: loop header
LB: loop body
LE: loop exit
PB: predicated region body
PF: predicated region fallthrough
CT: control target
= control target key end

     0   :  { %s3070_s15 = smov 0   ;;  %s3072_s16 = smov 0   ;;  %s4175_s0 = inlined_call_operand.vmem [shape: bf16[2,18,18,3], index: 0, kind: input, shape index: {}]   ;;  %s4176_s1 = inlined_call_operand.vmem [shape: bf16[3,9,8], index: 1, kind: input, shape index: {}]   ;;  %s4177_s2 = inlined_call_operand.vmem [shape: f32[1,8], index: 2, kind: input, shape index: {}]   ;;  %s4178_s3 = inlined_call_operand.vmem [shape: f32[1,8], index: 3, kind: input, shape index: {}]   ;;  %s4179_s4 = inlined_call_operand.vmem [shape: bf16[2,256,8], index: 4, kind: output, shape index: {}]  }
   0x1   :  { %s3074_s17 = smov 0  }
   0x2 LB: > { %s26_s18 = sadd.s32 1, %s3036_s16  ;;  %p2566_p0 = scmp.ge.s32.totalorder %s3040_s17, 1  ;;  %s3040_s17 = sphi %s3074_s17, %s14_s17   ;;  %s3036_s16 = sphi %s3072_s16, %s4181_s16   ;;  %s3032_s15 = sphi %s3070_s15, %s4180_s15  }
   0x3   : > { %p28_p1 = scmp.ge.s32.totalorder %s26_s18, 2  ;;  %p176_p2 = scmp.lt.s32.totalorder %s3040_s17, 3 }
   0x5   : > { %s4183_s18 = smov (%p28_p1, %s26_s18), 0  ;;  %p177_p3 = pnand %p2566_p0, %p176_p2 }
   0x6   : > { %p206_p4 = scmp.lt.s32.totalorder (!%p177_p3), %s3032_s15, 1  ;;  %s3042_s23 = smov (!%p177_p3), 6  }
   0x7   : > { %180 = sbr.rel (%p177_p3) target bundleno = 536 (0x218), region = 36  ;;  %s3043_s24 = smov (!%p177_p3), 3  }
   0xc   : > { %s4185_s15 = smov (!%p206_p4, %s3032_s15), 1  ;;  %vm627_vm0 = vcmask 1046528   ;;  %vm402_vm1 = vsmask.f32 7424  ;;  %vm1365_vm2 = vcmask 1043456   ;;  %vm1366_vm3 = vcmask 1044480  }
   0xd   : > { %s2979_s19 = smul.u32 216, %s4185_s15  ;;  %vm708_vm4 = vcmask 23552   ;;  %vm741_vm5 = vcmask 48128   ;;  %vm1332_vm6 = vcmask 72704   ;;  %vm2438_vm7 = vcmask 60416  }
   0xf   : > { %s3094_s22 = scalar_lea.vmem %s4175_s0, %s2979_s19  ;;  %s2924_s19 = sshll.u32 %s4185_s15, 7 }
  0x10   : > { %v3097_v0 = vld [vmem:[%s3094_s22 + $0x9c] sm:$0xff]  ;;  %v2672_v1 = vld [vmem:[%s3094_s22 + $0xa4] sm:$0x1]  ;;  %v228_v4 = vld [vmem:[%s3094_s22 + $0x8] sm:$0x1] }
  0x11   : > { %v3101_v2 = vld [vmem:[%s3094_s22] sm:$0xff]  ;;  %v936_v3 = vunpack.c.l.b16 %v2672_v1  ;;  %v370_v6 = vunpack.c.l.b16 %v228_v4  ;;  %v1216_v9 = vrot.slane %v3097_v0, 1  ;;  %v1103_v10 = vshll.u32 %v3097_v0, 16  ;;  %v3109_v13 = vld [vmem:[%s3094_s22 + $0x18] sm:$0xff]  ;;  %v2636_v16 = vld [vmem:[%s3094_s22 + $0x14] sm:$0x1] }
  0x12   : > { %v2790_v5 = vld [vmem:[%s3094_s22 + $0x20] sm:$0x1]  ;;  %v628_v12 = vrot.slane %v3101_v2, 1  ;;  %v1101_v18 = vshrl.u32 %v3097_v0, 16  ;;  %v1994_v23 = vrot.slane %v3109_v13, 1  ;;  %v924_v24 = vunpack.c.l.b16 %v2636_v16  ;;  %v3123_v34 = vld [vmem:[%s3094_s22 + $0xc] sm:$0xff] }
  0x13   : > { %v1738_v7 = vunpack.c.l.b16 %v2790_v5  ;;  %v952_v8 = vpack.c.b16 %v936_v3, %v936_v3  ;;  %v386_v11 = vpack.c.b16 %v370_v6, %v370_v6  ;;  %v1105_v19 = vrot.slane %v1103_v10, 1  ;;  %v2793_v33 = vld [vmem:[%s3094_s22 + $0x2c] sm:$0x1]  ;;  %v2675_v42 = vld [vmem:[%s3094_s22 + $0xb0] sm:$0x1]  ;;  %v3129_v43 = vld [vmem:[%s3094_s22 + $0x24] sm:$0xff] }
  0x14   : > { %v1773_v26 = vshll.u32 %v3109_v13, 16  ;;  %v404_v27 = vshrl.u32 %v3101_v2, 16  ;;  %v406_v28 = vshll.u32 %v3101_v2, 16  ;;  %v940_v35 = vpack.c.b16 %v924_v24, %v924_v24  ;;  %v2639_v54 = vld [vmem:[%s3094_s22 + $0x20] sm:$0x1]  ;;  %v3145_v59 = vld [vmem:[%s3094_s22 + $0xa8] sm:$0xff] }
  0x15   : > { %v1217_v14 = vrot.slane %v952_v8, 1  ;;  %v1754_v15 = vpack.c.b16 %v1738_v7, %v1738_v7  ;;  %v629_v17 = vrot.slane %v386_v11, 1  ;;  %v1108_v20 = vshll.u32 %v952_v8, 16  ;;  %v231_v58 = vld [vmem:[%s3094_s22 + $0x14] sm:$0x1]  ;;  %v3150_v4 = vld [vmem:[%s3094_s22 + $0x18] sm:$0xff] }
  0x16   : > { %v1106_v29 = vor.u32 %v1105_v19, %v1101_v18  ;;  %v411_v31 = vshll.u32 %v386_v11, 16  ;;  %v408_v32 = vrot.slane %v406_v28, 1  ;;  %v1771_v36 = vshrl.u32 %v3109_v13, 16  ;;  %v3155_v8 = vld [vmem:[%s3094_s22 + $0xc] sm:$0xff] }
  0x17   : > { %v1218_v21 = vsel %vm627_vm0, %v1216_v9, %v1217_v14  ;;  %v630_v22 = vsel %vm627_vm0, %v628_v12, %v629_v17  ;;  %v1995_v25 = vrot.slane %v1754_v15, 1  ;;  %v1110_v30 = vrot.slane %v1108_v20, 1 }
  0x18   : > { %1252 = vrot.lane.b32.xlu1 %v1218_v21, %s3042_s23  ;;  %676 = vrot.lane.b32.xlu0 %v630_v22, %s3042_s23  ;;  %v413_v37 = vrot.slane %v411_v31, 1  ;;  %v1775_v39 = vrot.slane %v1773_v26, 1  ;;  %v1778_v40 = vshll.u32 %v1754_v15, 16  ;;  %v409_v41 = vor.u32 %v408_v32, %v404_v27 }
  0x19   : > { %v1996_v38 = vsel %vm627_vm0, %v1994_v23, %v1995_v25  ;;  %v1111_v44 = vsel %vm402_vm1, %v1106_v29, %v1110_v30  ;;  %v1739_v45 = vunpack.c.l.b16 %v2793_v33  ;;  %v1180_v47 = vrot.slane %v3123_v34, 1  ;;  %v2678_v25 = vld [vmem:[%s3094_s22 + $0xbc] sm:$0x1]  ;;  %v3171_v33 = vld [vmem:[%s3094_s22 + $0xb4] sm:$0xff] }
  0x1a   : > { %v414_v46 = vsel %vm402_vm1, %v409_v41, %v413_v37  ;;  %v937_v48 = vunpack.c.l.b16 %v2675_v42  ;;  %v1181_v49 = vrot.slane %v940_v35, 1  ;;  %v1776_v50 = vor.u32 %v1775_v39, %v1771_v36 }
  0x1b   : > { %595 = vrot.lane.b32.xlu2 %v414_v46, %s3043_s24  ;;  %v1780_v51 = vrot.slane %v1778_v40, 1  ;;  %v1785_v52 = vshll.u32 %v3129_v43, 16  ;;  %v3138_v53 = vpack.c.b16 %v1739_v45, %v1739_v45  ;;  %v957_v55 = vshrl.u32 %v3123_v34, 16 }
  0x1c   : > { %v959_v56 = vshll.u32 %v3123_v34, 16  ;;  %v964_v57 = vshll.u32 %v940_v35, 16  ;;  %v953_v60 = vpack.c.b16 %v937_v48, %v937_v48  ;;  %v1182_v63 = vsel %vm627_vm0, %v1180_v47, %v1181_v49 }
  0x1d   : > { %v1783_v1 = vshrl.u32 %v3129_v43, 16  ;;  %v1787_v3 = vrot.slane %v1785_v52, 1  ;;  %v925_v5 = vunpack.c.l.b16 %v2639_v54  ;;  %v1781_v6 = vsel %vm402_vm1, %v1776_v50, %v1780_v51  ;;  %v2796_v54 = vld [vmem:[%s3094_s22 + $0x38] sm:$0x1] }
  0x1e   : > { %v961_v61 = vrot.slane %v959_v56, 1  ;;  %v966_v62 = vrot.slane %v964_v57, 1  ;;  %v1790_v7 = vshll.u32 %v3138_v53, 16  ;;  %v371_v9 = vunpack.c.l.b16 %v231_v58  ;;  %v3188_v57 = vld [vmem:[%s3094_s22 + $0x30] sm:$0xff] }
  0x1f   : > { %v1113_v11 = vshrl.u32 %v3145_v59, 16  ;;  %v1115_v12 = vshll.u32 %v3145_v59, 16  ;;  %v1219_v14 = vrot.slane %v3145_v59, 1  ;;  %v1220_v15 = vrot.slane %v953_v60, 1 }
  0x20   : > { %2042 = vrot.lane.b32.xlu1 %v1996_v38, %s3042_s23  ;;  %1172 = vrot.lane.b32.xlu0 %v1111_v44, %s3043_s24  ;;  %v962_v10 = vor.u32 %v961_v61, %v957_v55  ;;  %v1120_v17 = vshll.u32 %v953_v60, 16  ;;  %v1788_v18 = vor.u32 %v1787_v3, %v1783_v1  ;;  %v941_v19 = vpack.c.b16 %v925_v5, %v925_v5 }
  0x21   : > { %v971_v20 = vshll.u32 %v3150_v4, 16  ;;  %v1117_v21 = vrot.slane %v1115_v12, 1  ;;  %v1792_v22 = vrot.slane %v1790_v7, 1  ;;  %v387_v23 = vpack.c.b16 %v371_v9, %v371_v9 }
  0x22   : > { %v967_v16 = vsel %vm402_vm1, %v962_v10, %v966_v62  ;;  %v418_v24 = vshll.u32 %v3155_v8, 16  ;;  %v1122_v26 = vrot.slane %v1120_v17, 1  ;;  %v969_v28 = vshrl.u32 %v3150_v4, 16  ;;  %v234_v10 = vld [vmem:[%s3094_s22 + $0x20] sm:$0x1] }
  0x23   : > { %1148 = vrot.lane.b32.xlu2 %v967_v16, %s3043_s24  ;;  %v1118_v27 = vor.u32 %v1117_v21, %v1113_v11  ;;  %v416_v29 = vshrl.u32 %v3155_v8, 16  ;;  %v1221_v30 = vsel %vm627_vm0, %v1219_v14, %v1220_v15  ;;  %v973_v31 = vrot.slane %v971_v20, 1  ;;  %v3200_v11 = vld [vmem:[%s3094_s22 + $0x24] sm:$0xff] }
  0x24   : > { %v976_v32 = vshll.u32 %v941_v19, 16  ;;  %v938_v35 = vunpack.c.l.b16 %v2678_v25  ;;  %v1793_v36 = vsel %vm402_vm1, %v1788_v18, %v1792_v22  ;;  %v420_v37 = vrot.slane %v418_v24, 1  ;;  %v3208_v22 = vld [vmem:[%s3094_s22 + $0x18] sm:$0xff] }
  0x25   : > { %v423_v38 = vshll.u32 %v387_v23, 16  ;;  %v1123_v39 = vsel %vm402_vm1, %v1118_v27, %v1122_v26  ;;  %v974_v40 = vor.u32 %v973_v31, %v969_v28  ;;  %v1127_v44 = vshll.u32 %v3171_v33, 16  ;;  %v2799_v26 = vld [vmem:[%s3094_s22 + $0x44] sm:$0x1]  ;;  %v2681_v27 = vld [vmem:[%s3094_s22 + $0xc8] sm:$0x1] }
  0x26   : > { %v978_v41 = vrot.slane %v976_v32, 1  ;;  %v954_v42 = vpack.c.b16 %v938_v35, %v938_v35  ;;  %v421_v45 = vor.u32 %v420_v37, %v416_v29  ;;  %v1997_v47 = vrot.slane %v3129_v43, 1 }
  0x27   : > { %v425_v46 = vrot.slane %v423_v38, 1  ;;  %v1998_v48 = vrot.slane %v3138_v53, 1  ;;  %v1125_v50 = vshrl.u32 %v3171_v33, 16  ;;  %v1129_v51 = vrot.slane %v1127_v44, 1 }
  0x28   : > { %1228 = vrot.lane.b32.xlu1 %v1182_v63, %s3042_s23  ;;  %1962 = vrot.lane.b32.xlu0 %v1781_v6, %s3043_s24  ;;  %v979_v49 = vsel %vm402_vm1, %v974_v40, %v978_v41  ;;  %v1132_v52 = vshll.u32 %v954_v42, 16  ;;  %v1740_v58 = vunpack.c.l.b16 %v2796_v54  ;;  %v1183_v61 = vrot.slane %v3150_v4, 1  ;;  %v2642_v63 = vld [vmem:[%s3094_s22 + $0x2c] sm:$0x1] }
  0x29   : > { %v426_v55 = vsel %vm402_vm1, %v421_v45, %v425_v46  ;;  %v1999_v56 = vsel %vm627_vm0, %v1997_v47, %v1998_v48  ;;  %v1130_v53 = vor.u32 %v1129_v51, %v1125_v50  ;;  %v1184_v62 = vrot.slane %v941_v19, 1 }
  0x2a   : > { %v1134_v60 = vrot.slane %v1132_v52, 1  ;;  %v631_v1 = vrot.slane %v3155_v8, 1  ;;  %v632_v3 = vrot.slane %v387_v23, 1  ;;  %v1797_v5 = vshll.u32 %v3188_v57, 16 }
  0x2b   : > { %1174 = vrot.lane.b32.xlu2 %v1123_v39, %s3043_s24  ;;  %v1756_v6 = vpack.c.b16 %v1740_v58, %v1740_v58  ;;  %v1185_v9 = vsel %vm627_vm0, %v1183_v61, %v1184_v62  ;;  %v926_v12 = vunpack.c.l.b16 %v2642_v63  ;;  %v1795_v15 = vshrl.u32 %v3188_v57, 16  ;;  %v3223_v39 = vld [vmem:[%s3094_s22 + $0x3c] sm:$0xff]  ;;  %v237_v58 = vld [vmem:[%s3094_s22 + $0x2c] sm:$0x1] }
  0x2c   : > { %v1135_v7 = vsel %vm402_vm1, %v1130_v53, %v1134_v60  ;;  %v633_v14 = vsel %vm627_vm0, %v631_v1, %v632_v3  ;;  %v1799_v16 = vrot.slane %v1797_v5, 1  ;;  %v2000_v18 = vrot.slane %v3188_v57, 1  ;;  %v3241_v5 = vld [vmem:[%s3094_s22 + $0x24] sm:$0xff] }
  0x2d   : > { %v1802_v17 = vshll.u32 %v1756_v6, 16  ;;  %v2001_v19 = vrot.slane %v1756_v6, 1  ;;  %v1222_v20 = vrot.slane %v3171_v33, 1  ;;  %v1223_v21 = vrot.slane %v954_v42, 1  ;;  %v3226_v42 = vld [vmem:[%s3094_s22 + $0xc0] sm:$0xff] }
  0x2e   : > { %v372_v23 = vunpack.c.l.b16 %v234_v10  ;;  %v3211_v24 = vpack.c.b16 %v926_v12, %v926_v12  ;;  %v983_v25 = vshll.u32 %v3200_v11, 16  ;;  %v1800_v28 = vor.u32 %v1799_v16, %v1795_v15 }
  0x2f   : > { %v1804_v29 = vrot.slane %v1802_v17, 1  ;;  %v2002_v31 = vsel %vm627_vm0, %v2000_v18, %v2001_v19  ;;  %v1224_v32 = vsel %vm627_vm0, %v1222_v20, %v1223_v21  ;;  %v1741_v40 = vunpack.c.l.b16 %v2799_v26 }
  0x30   : > { %1254 = vrot.lane.b32.xlu1 %v1221_v30, %s3042_s23  ;;  %1964 = vrot.lane.b32.xlu0 %v1793_v36, %s3043_s24  ;;  %v430_v30 = vshll.u32 %v3208_v22, 16  ;;  %v388_v35 = vpack.c.b16 %v372_v23, %v372_v23  ;;  %v981_v36 = vshrl.u32 %v3200_v11, 16  ;;  %v985_v37 = vrot.slane %v983_v25, 1  ;;  %v2645_v23 = vld [vmem:[%s3094_s22 + $0x38] sm:$0x1] }
  0x31   : > { %v988_v38 = vshll.u32 %v3211_v24, 16  ;;  %v939_v41 = vunpack.c.l.b16 %v2681_v27  ;;  %v1805_v44 = vsel %vm402_vm1, %v1800_v28, %v1804_v29  ;;  %v428_v45 = vshrl.u32 %v3208_v22, 16 }
  0x32   : > { %v432_v46 = vrot.slane %v430_v30, 1  ;;  %v435_v47 = vshll.u32 %v388_v35, 16  ;;  %v634_v48 = vrot.slane %v3208_v22, 1  ;;  %v986_v50 = vor.u32 %v985_v37, %v981_v36  ;;  %v2802_v36 = vld [vmem:[%s3094_s22 + $0x50] sm:$0x1] }
  0x33   : > { %2044 = vrot.lane.b32.xlu2 %v1999_v56, %s3042_s23  ;;  %v990_v51 = vrot.slane %v988_v38, 1  ;;  %v1757_v52 = vpack.c.b16 %v1741_v40, %v1741_v40  ;;  %v1809_v54 = vshll.u32 %v3223_v39, 16  ;;  %v1139_v56 = vshll.u32 %v3226_v42, 16 }
  0x34   : > { %v433_v53 = vor.u32 %v432_v46, %v428_v45  ;;  %v437_v60 = vrot.slane %v435_v47, 1  ;;  %v1807_v62 = vshrl.u32 %v3223_v39, 16  ;;  %v1137_v3 = vshrl.u32 %v3226_v42, 16  ;;  %v264_v46 = vld [vmem:[%s3094_s22 + $0x98] sm:$0x1]  ;;  %v3268_v47 = vld [vmem:[%s3094_s22 + $0x48] sm:$0xff] }
  0x35   : > { %v1811_v63 = vrot.slane %v1809_v54, 1  ;;  %v1814_v1 = vshll.u32 %v1757_v52, 16  ;;  %v373_v6 = vunpack.c.l.b16 %v237_v58  ;;  %v442_v17 = vshll.u32 %v3241_v5, 16 }
  0x36   : > { %v438_v12 = vsel %vm402_vm1, %v433_v53, %v437_v60  ;;  %v1186_v20 = vrot.slane %v3200_v11, 1  ;;  %v1187_v21 = vrot.slane %v3211_v24, 1  ;;  %v440_v26 = vshrl.u32 %v3241_v5, 16 }
  0x37   : > { %v1816_v15 = vrot.slane %v1814_v1, 1  ;;  %v389_v16 = vpack.c.b16 %v373_v6, %v373_v6  ;;  %v444_v27 = vrot.slane %v442_v17, 1  ;;  %v2003_v38 = vrot.slane %v3223_v39, 1  ;;  %v2648_v1 = vld [vmem:[%s3094_s22 + $0x44] sm:$0x1]  ;;  %v3293_v17 = vld [vmem:[%s3094_s22 + $0x3c] sm:$0xff] }
  0x38   : > { %1150 = vrot.lane.b32.xlu1 %v979_v49, %s3043_s24  ;;  %597 = vrot.lane.b32.xlu0 %v426_v55, %s3043_s24  ;;  %v635_v49 = vrot.slane %v388_v35, 1  ;;  %v955_v55 = vpack.c.b16 %v939_v41, %v939_v41  ;;  %v1188_v30 = vsel %vm627_vm0, %v1186_v20, %v1187_v21  ;;  %v2004_v40 = vrot.slane %v1757_v52, 1  ;;  %v2770_v21 = vld [vmem:[%s4176_s1] sm:$0xf] }
  0x39   : > { %v447_v28 = vshll.u32 %v389_v16, 16  ;;  %v445_v24 = vor.u32 %v444_v27, %v440_v26  ;;  %v1225_v41 = vrot.slane %v3226_v42, 1  ;;  %v637_v58 = vrot.slane %v3241_v5, 1  ;;  %v240_v5 = vld [vmem:[%s3094_s22 + $0x38] sm:$0x1] }
  0x3a   : > { %v636_v61 = vsel %vm627_vm0, %v634_v48, %v635_v49  ;;  %v1144_v10 = vshll.u32 %v955_v55, 16  ;;  %v1742_v48 = vunpack.c.l.b16 %v2802_v36  ;;  %v638_v53 = vrot.slane %v389_v16, 1 }
  0x3b   : > { %678 = vrot.lane.b32.xlu2 %v633_v14, %s3042_s23  ;;  %v1812_v14 = vor.u32 %v1811_v63, %v1807_v62  ;;  %v449_v35 = vrot.slane %v447_v28, 1  ;;  %v382_v60 = vunpack.c.l.b16 %v264_v46  ;;  %v1821_v63 = vshll.u32 %v3268_v47, 16 }
  0x3c   : > { %v1146_v19 = vrot.slane %v1144_v10, 1  ;;  %v3280_v62 = vpack.c.b16 %v1742_v48, %v1742_v48  ;;  %v639_v10 = vsel %vm627_vm0, %v637_v58, %v638_v53  ;;  %v267_v48 = vld [vmem:[%s3094_s22 + $0xa4] sm:$0x1] }
  0x3d   : > { %v1817_v25 = vsel %vm402_vm1, %v1812_v14, %v1816_v15  ;;  %v450_v49 = vsel %vm402_vm1, %v445_v24, %v449_v35  ;;  %v1819_v14 = vshrl.u32 %v3268_v47, 16  ;;  %v1823_v15 = vrot.slane %v1821_v63, 1 }
  0x3e   : > { %v1826_v16 = vshll.u32 %v3280_v62, 16  ;;  %v383_v58 = vunpack.c.l.b16 %v267_v48 }
  0x3f   : > { %v1824_v36 = vor.u32 %v1823_v15, %v1819_v14 }
  0x40   : > { %1176 = vrot.lane.b32.xlu1 %v1135_v7, %s3043_s24  ;;  %1230 = vrot.lane.b32.xlu0 %v1185_v9, %s3042_s23  ;;  %v991_v7 = vsel %vm402_vm1, %v986_v50, %v990_v51  ;;  %v1141_v9 = vrot.slane %v1139_v56, 1  ;;  %v2005_v56 = vsel %vm627_vm0, %v2003_v38, %v2004_v40  ;;  %v1828_v38 = vrot.slane %v1826_v16, 1 }
  0x42   : > { %v1142_v18 = vor.u32 %v1141_v9, %v1137_v3  ;;  %v1829_v53 = vsel %vm402_vm1, %v1824_v36, %v1828_v38  ;;  %v1192_v38 = vrot.slane %v3293_v17, 1 }
  0x43   : > { %1966 = vrot.lane.b32.xlu2 %v1805_v44, %s3043_s24  ;;  %v1226_v44 = vrot.slane %v955_v55, 1 }
  0x44   : > { %v1147_v29 = vsel %vm402_vm1, %v1142_v18, %v1146_v19  ;;  %v928_v18 = vunpack.c.l.b16 %v2648_v1  ;;  %v374_v19 = vunpack.c.l.b16 %v240_v5 }
  0x45   : > { %v1227_v52 = vsel %vm627_vm0, %v1225_v41, %v1226_v44  ;;  %v1007_v41 = vshll.u32 %v3293_v17, 16 }
  0x46   : > { %v3309_v40 = vpack.c.b16 %v928_v18, %v928_v18  ;;  %v2006_v18 = vrot.slane %v3268_v47, 1  ;;  %v2904_v47 = vld [vmem:[%s4176_s1 + $0x10] sm:$0xf] }
  0x48   : > { %2046 = vrot.lane.b32.xlu1 %v2002_v31, %s3042_s23  ;;  %1256 = vrot.lane.b32.xlu0 %v1224_v32, %s3042_s23  ;;  %v3257_v31 = vld [vmem:[%s3094_s22 + $0x30] sm:$0xff]  ;;  %v927_v32 = vunpack.c.l.b16 %v2645_v23  ;;  %v2941_v23 = vld [vmem:[%s4176_s1] sm:$0x10] }
  0x49   : > { %v995_v37 = vshll.u32 %v3257_v31, 16  ;;  %v993_v50 = vshrl.u32 %v3257_v31, 16  ;;  %v1189_v39 = vrot.slane %v3257_v31, 1 }
  0x4a   : > { %v943_v45 = vpack.c.b16 %v927_v32, %v927_v32  ;;  %v2771_v32 = vor.u32 %v2941_v23, %v2770_v21  ;;  %v2805_v23 = vld [vmem:[%s3094_s22 + $0x5c] sm:$0x1] }
  0x4b   : > { %599 = vrot.lane.b32.xlu2 %v438_v12, %s3043_s24  ;;  %v997_v51 = vrot.slane %v995_v37, 1  ;;  %v398_v12 = vpack.c.b16 %v382_v60, %v382_v60 }
  0x4c   : > { %v1000_v54 = vshll.u32 %v943_v45, 16  ;;  %v1190_v55 = vrot.slane %v943_v45, 1  ;;  %v3313_v45 = vpack.c.b16 %v374_v19, %v374_v19  ;;  %v2007_v19 = vrot.slane %v3280_v62, 1  ;;  %v2975_v62 = vld [vmem:[%s4176_s1 + $0x10] sm:$0x10] }
  0x4d   : > { %v998_v3 = vor.u32 %v997_v51, %v993_v50  ;;  %v555_v28 = vshll.u32 %v398_v12, 16  ;;  %v665_v35 = vrot.slane %v398_v12, 1  ;;  %v3336_v12 = vpack.c.b16 %v383_v58, %v383_v58 }
  0x4e   : > { %v1002_v6 = vrot.slane %v1000_v54, 1  ;;  %v1191_v9 = vsel %vm627_vm0, %v1189_v39, %v1190_v55  ;;  %v1005_v54 = vshrl.u32 %v3293_v17, 16  ;;  %v1009_v39 = vrot.slane %v1007_v41, 1 }
  0x4f   : > { %v557_v50 = vrot.slane %v555_v28, 1  ;;  %v459_v63 = vshll.u32 %v3313_v45, 16  ;;  %v1193_v41 = vrot.slane %v3309_v40, 1 }
  0x50   : > { %680 = vrot.lane.b32.xlu1 %v636_v61, %s3042_s23  ;;  %1152 = vrot.lane.b32.xlu0 %v991_v7, %s3043_s24  ;;  %v3278_v61 = vld [vmem:[%s3094_s22 + $0x90] sm:$0xff]  ;;  %v1003_v20 = vsel %vm402_vm1, %v998_v3, %v1002_v6  ;;  %v2750_v3 = vld [vmem:[%s4176_s1 + $0x8] sm:$0xf] }
  0x51   : > { %v550_v7 = vshll.u32 %v3278_v61, 16  ;;  %v548_v26 = vshrl.u32 %v3278_v61, 16  ;;  %v664_v24 = vrot.slane %v3278_v61, 1  ;;  %v2958_v6 = vld [vmem:[%s4176_s1 + $0x8] sm:$0x10]  ;;  %v461_v16 = vrot.slane %v459_v63, 1 }
  0x52   : > { %v2751_v5 = vor.u32 %v2958_v6, %v2750_v3  ;;  %v3381_v3 = vld [vmem:[%s3094_s22 + $0x3c] sm:$0xff] }
  0x53   : > { %1232 = vrot.lane.b32.xlu2 %v1188_v30, %s3042_s23  ;;  %v552_v27 = vrot.slane %v550_v7, 1  ;;  %v666_v51 = vsel %vm627_vm0, %v664_v24, %v665_v35  ;;  %v3355_v35 = vld [vmem:[%s3094_s22 + $0x54] sm:$0xff] }
  0x58   : > { %1968 = vrot.lane.b32.xlu1 %v1817_v25, %s3043_s24  ;;  %1178 = vrot.lane.b32.xlu0 %v1147_v29, %s3043_s24  ;;  %v3303_v25 = vld [vmem:[%s3094_s22 + $0x30] sm:$0xff]  ;;  %v3044_v29 = vmov 65535  }
  0x59   : > { %v1367_v30 = vsel %vm1365_vm2, 4294967295, %v3044_v29  ;;  %v454_v46 = vshll.u32 %v3303_v25, 16  ;;  %v452_v55 = vshrl.u32 %v3303_v25, 16  ;;  %v2008_v29 = vsel %vm627_vm0, %v2006_v18, %v2007_v19 }
  0x5a   : > { %v1368_v37 = vsel %vm1366_vm3, %v1367_v30, 0  ;;  %v1743_v30 = vunpack.c.l.b16 %v2805_v23  ;;  %v640_v48 = vrot.slane %v3303_v25, 1 }
  0x5b   : > { %1258 = vrot.lane.b32.xlu2 %v1227_v52, %s3042_s23  ;;  %v1499_v44 = vand.u32 %v2771_v32, %v1368_v37  ;;  %v1012_v52 = vshll.u32 %v3309_v40, 16  ;;  %v456_v60 = vrot.slane %v454_v46, 1  ;;  %v1370_v14 = vand.u32 %v2751_v5, %v1368_v37  ;;  %v2651_v46 = vld [vmem:[%s3094_s22 + $0x50] sm:$0x1] }
  0x5c   : > { %v2905_v32 = vor.u32 %v2975_v62, %v2904_v47  ;;  %v1194_v40 = vsel %vm627_vm0, %v1192_v38, %v1193_v41  ;;  %v464_v62 = vshrl.u32 %v3381_v3, 16 }
  0x5d   : > { %1508 = vmatpush.bf16.msra.mxu1 %v1499_v44  ;;  %v457_v15 = vor.u32 %v456_v60, %v452_v55  ;;  %2976 = vmatpush.bf16.msra.mxu3 %v1370_v14 }
  0x5e   : > { %1379 = vmatpush.bf16.msra.mxu0 %v1370_v14 }
  0x5f   : > { %v462_v28 = vsel %vm402_vm1, %v457_v15, %v461_v16 }
  0x60   : > { %601 = vrot.lane.b32.xlu1 %v450_v49, %s3043_s24  ;;  %2048 = vrot.lane.b32.xlu0 %v2005_v56, %s3042_s23  ;;  %v553_v49 = vor.u32 %v552_v27, %v548_v26  ;;  %v3320_v56 = vld [vmem:[%s3094_s22 + $0x9c] sm:$0xff]  ;;  %v567_v27 = vshll.u32 %v3336_v12, 16 }
  0x61   : > { %v562_v7 = vshll.u32 %v3320_v56, 16  ;;  %2977 = vmatpush.bf16.msrb.mxu3 %v1499_v44  ;;  %v3361_v44 = vand.u32 %v2905_v32, %v1368_v37  ;;  %v929_v37 = vunpack.c.l.b16 %v2651_v46  ;;  %v667_v63 = vrot.slane %v3320_v56, 1 }
  0x62   : > { %v558_v1 = vsel %vm402_vm1, %v553_v49, %v557_v50  ;;  %v569_v36 = vrot.slane %v567_v27, 1  ;;  %v641_v49 = vrot.slane %v3313_v45, 1  ;;  %v1833_v50 = vshll.u32 %v3355_v35, 16 }
  0x63   : > { %1154 = vrot.lane.b32.xlu2 %v1003_v20, %s3043_s24  ;;  %v560_v20 = vshrl.u32 %v3320_v56, 16  ;;  %v564_v21 = vrot.slane %v562_v7, 1  ;;  %2188 = vmatpush.bf16.msra.mxu2 %v3361_v44  ;;  %v1831_v45 = vshrl.u32 %v3355_v35, 16  ;;  %v3384_v5 = vpack.c.b16 %v929_v37, %v929_v37 }
  0x64   : > { %v642_v25 = vsel %vm627_vm0, %v640_v48, %v641_v49  ;;  %v1835_v55 = vrot.slane %v1833_v50, 1  ;;  %v466_v56 = vshll.u32 %v3381_v3, 16 }
  0x65   : > { %v565_v24 = vor.u32 %v564_v21, %v560_v20  ;;  %v3396_v20 = vld [vmem:[%s3094_s22 + $0x60] sm:$0xff]  ;;  %v1024_v27 = vshll.u32 %v3384_v5, 16 }
  0x66   : > { %v1836_v14 = vor.u32 %v1835_v55, %v1831_v45  ;;  %v1845_v38 = vshll.u32 %v3396_v20, 16 }
  0x67   : > { %v570_v17 = vsel %vm402_vm1, %v565_v24, %v569_v36  ;;  %v643_v24 = vrot.slane %v3381_v3, 1  ;;  %v1026_v49 = vrot.slane %v1024_v27, 1 }
  0x68   : > { %1234 = vrot.lane.b32.xlu1 %v1191_v9, %s3042_s23  ;;  %682 = vrot.lane.b32.xlu0 %v639_v10, %s3042_s23  ;;  %v1010_v9 = vor.u32 %v1009_v39, %v1005_v54  ;;  %v1014_v10 = vrot.slane %v1012_v52, 1  ;;  %v243_v39 = vld [vmem:[%s3094_s22 + $0x44] sm:$0x1]  ;;  %v3372_v52 = vld [vmem:[%s3094_s22 + $0x48] sm:$0xff] }
  0x69   : > { %v375_v6 = vunpack.c.l.b16 %v243_v39  ;;  %v1019_v7 = vshll.u32 %v3372_v52, 16  ;;  %v1017_v23 = vshrl.u32 %v3372_v52, 16 }
  0x6a   : > { %v1015_v26 = vsel %vm402_vm1, %v1010_v9, %v1014_v10  ;;  %v2808_v9 = vld [vmem:[%s3094_s22 + $0x68] sm:$0x1]  ;;  %v270_v10 = vld [vmem:[%s3094_s22 + $0xb0] sm:$0x1] }
  0x6b   : > { %619 = vrot.lane.b32.xlu2 %v558_v1, %s3043_s24  ;;  %v668_v1 = vrot.slane %v3336_v12, 1  ;;  %v391_v19 = vpack.c.b16 %v375_v6, %v375_v6  ;;  %v1744_v21 = vunpack.c.l.b16 %v2808_v9 }
  0x6d   : > { %v669_v18 = vsel %vm627_vm0, %v667_v63, %v668_v1  ;;  %v471_v32 = vshll.u32 %v391_v19, 16  ;;  %v3407_v36 = vpack.c.b16 %v1744_v21, %v1744_v21  ;;  %v644_v46 = vrot.slane %v391_v19, 1  ;;  %v3427_v63 = vld [vmem:[%s3094_s22 + $0x48] sm:$0xff] }
  0x6f   : > { %v473_v37 = vrot.slane %v471_v32, 1  ;;  %v476_v32 = vshrl.u32 %v3427_v63, 16 }
  0x70   : > { %700 = vrot.lane.b32.xlu1 %v666_v51, %s3042_s23  ;;  %1970 = vrot.lane.b32.xlu0 %v1829_v53, %s3043_s24  ;;  %v1759_v51 = vpack.c.b16 %v1743_v30, %v1743_v30  ;;  %v2009_v53 = vrot.slane %v3355_v35, 1  ;;  %v468_v30 = vrot.slane %v466_v56, 1 }
  0x72   : > { %v1838_v58 = vshll.u32 %v1759_v51, 16  ;;  %v2010_v60 = vrot.slane %v1759_v51, 1  ;;  %v469_v39 = vor.u32 %v468_v30, %v464_v62 }
  0x73   : > { %2050 = vrot.lane.b32.xlu2 %v2008_v29, %s3042_s23  ;;  %v3401_v29 = vld [vmem:[%s3094_s22 + $0xa8] sm:$0xff] }
  0x74   : > { %v1840_v15 = vrot.slane %v1838_v58, 1  ;;  %v2011_v12 = vsel %vm627_vm0, %v2009_v53, %v2010_v60  ;;  %v1850_v58 = vshll.u32 %v3407_v36, 16  ;;  %v645_v53 = vsel %vm627_vm0, %v643_v24, %v644_v46 }
  0x75   : > { %v596_v54 = vpop.permute.xlu2 %595  ;;  %v572_v6 = vshrl.u32 %v3401_v29, 16 }
  0x76   : > { %v1841_v47 = vsel %vm402_vm1, %v1836_v14, %v1840_v15  ;;  %v710_v41 = vsel %vm708_vm4, %v3101_v2, %v596_v54  ;;  %v1843_v2 = vshrl.u32 %v3396_v20, 16  ;;  %v1847_v54 = vrot.slane %v1845_v38, 1 }
  0x77   : > { %v1852_v15 = vrot.slane %v1850_v58, 1 }
  0x78   : > { %1156 = vrot.lane.b32.xlu1 %v1015_v26, %s3043_s24  ;;  %603 = vrot.lane.b32.xlu0 %v462_v28, %s3043_s24  ;;  %v1021_v26 = vrot.slane %v1019_v7, 1  ;;  %v384_v28 = vunpack.c.l.b16 %v270_v10  ;;  %v474_v10 = vsel %vm402_vm1, %v469_v39, %v473_v37  ;;  %v1848_v14 = vor.u32 %v1847_v54, %v1843_v2 }
  0x79   : > { %v670_v37 = vrot.slane %v3401_v29, 1 }
  0x7a   : > { %v1022_v48 = vor.u32 %v1021_v26, %v1017_v23  ;;  %v3414_v51 = vpack.c.b16 %v384_v28, %v384_v28  ;;  %v1195_v23 = vrot.slane %v3372_v52, 1  ;;  %v1196_v26 = vrot.slane %v3384_v5, 1  ;;  %v2654_v52 = vld [vmem:[%s3094_s22 + $0x5c] sm:$0x1] }
  0x7b   : > { %684 = vrot.lane.b32.xlu2 %v642_v25, %s3042_s23  ;;  %v1853_v62 = vsel %vm402_vm1, %v1848_v14, %v1852_v15  ;;  %v930_v46 = vunpack.c.l.b16 %v2654_v52 }
  0x7c   : > { %v1027_v60 = vsel %vm402_vm1, %v1022_v48, %v1026_v49  ;;  %v579_v9 = vshll.u32 %v3414_v51, 16 }
  0x7d   : > { %v3392_v16 = vpop.permute.xlu2 %1148  ;;  %v946_v58 = vpack.c.b16 %v930_v46, %v930_v46 }
  0x7e   : > { %v581_v21 = vrot.slane %v579_v9, 1 }
  0x80   : > { %621 = vrot.lane.b32.xlu1 %v570_v17, %s3043_s24  ;;  %1236 = vrot.lane.b32.xlu0 %v1194_v40, %s3042_s23  ;;  %v574_v17 = vshll.u32 %v3401_v29, 16  ;;  %v246_v40 = vld [vmem:[%s3094_s22 + $0x50] sm:$0x1] }
  0x81   : > { %v376_v1 = vunpack.c.l.b16 %v246_v40  ;;  %v2811_v40 = vld [vmem:[%s3094_s22 + $0x74] sm:$0x1] }
  0x82   : > { %v576_v7 = vrot.slane %v574_v17, 1  ;;  %v2013_v17 = vrot.slane %v3407_v36, 1  ;;  %v1745_v29 = vunpack.c.l.b16 %v2811_v40 }
  0x83   : > { %1972 = vrot.lane.b32.xlu2 %v1841_v47, %s3043_s24  ;;  %v3434_v56 = vpack.c.b16 %v376_v1, %v376_v1 }
  0x84   : > { %v577_v19 = vor.u32 %v576_v7, %v572_v6  ;;  %v1036_v7 = vshll.u32 %v946_v58, 16  ;;  %v3488_v14 = vpack.c.b16 %v1745_v29, %v1745_v29 }
  0x85   : > { %v3418_v45 = vpop.permute.xlu2 %1174  ;;  %v483_v38 = vshll.u32 %v3434_v56, 16 }
  0x86   : > { %v582_v5 = vsel %vm402_vm1, %v577_v19, %v581_v21  ;;  %v646_v19 = vrot.slane %v3427_v63, 1  ;;  %v647_v21 = vrot.slane %v3434_v56, 1  ;;  %v1862_v46 = vshll.u32 %v3488_v14, 16 }
  0x87   : > { %v485_v49 = vrot.slane %v483_v38, 1 }
  0x88   : > { %2052 = vrot.lane.b32.xlu1 %v2011_v12, %s3042_s23  ;;  %702 = vrot.lane.b32.xlu0 %v669_v18, %s3042_s23  ;;  %v478_v12 = vshll.u32 %v3427_v63, 16 }
  0x8a   : > { %v1253_v50 = vpop.permute.xlu1 %1252  ;;  %v677_v25 = vpop.permute.xlu0 %676  ;;  %v480_v24 = vrot.slane %v478_v12, 1 }
  0x8b   : > { %v743_v55 = vsel %vm741_vm5, %v710_v41, %v677_v25  ;;  %605 = vrot.lane.b32.xlu2 %v474_v10, %s3043_s24  ;;  %v1197_v41 = vsel %vm627_vm0, %v1195_v23, %v1196_v26  ;;  %v671_v25 = vrot.slane %v3414_v51, 1  ;;  %v3486_v10 = vld [vmem:[%s3094_s22 + $0xb4] sm:$0xff]  ;;  %v1287_v23 = vsel %vm708_vm4, %v3145_v59, %v3418_v45  ;;  %v3508_v59 = vld [vmem:[%s3094_s22 + $0x60] sm:$0xff] }
  0x8c   : > { %2772 = vmatmul.msk.bf16.vlgmr.msra.gmra.mxu1 %vm1332_vm6, %v743_v55  ;;  %v481_v48 = vor.u32 %v480_v24, %v476_v32  ;;  %v586_v32 = vshll.u32 %v3486_v10, 16 }
  0x8d   : > { %v3440_v28 = vpop.permute.xlu2 %2044  ;;  %v672_v1 = vsel %vm627_vm0, %v670_v37, %v671_v25  ;;  %v673_v25 = vrot.slane %v3486_v10, 1 }
  0x90   : > { %686 = vrot.lane.b32.xlu1 %v645_v53, %s3042_s23  ;;  %1158 = vrot.lane.b32.xlu0 %v1027_v60, %s3043_s24  ;;  %v486_v53 = vsel %vm402_vm1, %v481_v48, %v485_v49  ;;  %v648_v48 = vsel %vm627_vm0, %v646_v19, %v647_v21 }
  0x92   : > { %v2043_v18 = vpop.permute.xlu1 %2042  ;;  %v1173_v27 = vpop.permute.xlu0 %1172 }
  0x93   : > { %v1285_v47 = vsel %vm708_vm4, %v3097_v0, %v1173_v27  ;;  %v3455_v0 = vld [vmem:[%s3094_s22 + $0x54] sm:$0xff]  ;;  %1238 = vrot.lane.b32.xlu2 %v1197_v41, %s3042_s23  ;;  %v2657_v27 = vld [vmem:[%s3094_s22 + $0x68] sm:$0x1] }
  0x94   : > { %v1317_v30 = vsel %vm741_vm5, %v1285_v47, %v1253_v50  ;;  %v2012_v50 = vrot.slane %v3396_v20, 1  ;;  %v1031_v55 = vshll.u32 %v3455_v0, 16  ;;  %v1198_v12 = vrot.slane %v3455_v0, 1  ;;  %v249_v47 = vld [vmem:[%s3094_s22 + $0x5c] sm:$0x1] }
  0x95   : > { %2764 = vmatmul.msk.bf16.vlgmr.msra.gmra.mxu3 %vm1332_vm6, %v1317_v30  ;;  %v3469_v54 = vpop.permute.xlu2 %678  ;;  %v1038_v30 = vrot.slane %v1036_v7, 1  ;;  %v931_v49 = vunpack.c.l.b16 %v2657_v27 }
  0x96   : > { %2978 = vmatpush.bf16.msra.mxu3 %v3361_v44  ;;  %v1261_v44 = vsel %vm708_vm4, %v3123_v34, %v3392_v16  ;;  %v273_v34 = vld [vmem:[%s3094_s22 + $0xbc] sm:$0x1]  ;;  %v3476_v16 = vld [vmem:[%s3094_s22 + $0x6c] sm:$0xff]  ;;  %v2014_v60 = vsel %vm627_vm0, %v2012_v50, %v2013_v17  ;;  %v1033_v6 = vrot.slane %v1031_v55, 1  ;;  %v3513_v50 = vld [vmem:[%s3094_s22 + $0x54] sm:$0xff]  ;;  %v377_v17 = vunpack.c.l.b16 %v249_v47 }
  0x97   : > { %v385_v9 = vunpack.c.l.b16 %v273_v34  ;;  %v1857_v15 = vshll.u32 %v3476_v16, 16  ;;  %v490_v34 = vshll.u32 %v3513_v50, 16 }
  0x98   : > { %1974 = vrot.lane.b32.xlu1 %v1853_v62, %s3043_s24  ;;  %623 = vrot.lane.b32.xlu0 %v582_v5, %s3043_s24  ;;  %v1855_v5 = vshrl.u32 %v3476_v16, 16 }
  0x99   : > { %v401_v52 = vpack.c.b16 %v385_v9, %v385_v9  ;;  %v1859_v41 = vrot.slane %v1857_v15, 1  ;;  %v492_v47 = vrot.slane %v490_v34, 1  ;;  %v1201_v34 = vrot.slane %v3508_v59, 1 }
  0x9a   : > { %v1229_v39 = vpop.permute.xlu1 %1228  ;;  %v1963_v2 = vpop.permute.xlu0 %1962 }
  0x9b   : > { %v1293_v20 = vsel %vm741_vm5, %v1261_v44, %v1229_v39  ;;  %v2075_v36 = vsel %vm708_vm4, %v3109_v13, %v1963_v2  ;;  %v1029_v13 = vshrl.u32 %v3455_v0, 16  ;;  %704 = vrot.lane.b32.xlu2 %v672_v1, %s3042_s23  ;;  %v584_v44 = vshrl.u32 %v3486_v10, 16 }
  0x9c   : > { %2752 = vmatmul.msk.bf16.vlgmr.msra.gmra.mxu0 %vm1332_vm6, %v1293_v20  ;;  %v2107_v51 = vsel %vm741_vm5, %v2075_v36, %v2043_v18  ;;  %v1199_v18 = vrot.slane %v946_v58, 1  ;;  %v588_v39 = vrot.slane %v586_v32, 1  ;;  %v591_v37 = vshll.u32 %v401_v52, 16 }
  0x9d   : > { %2906 = vmatmul.msk.bf16.vlgmr.msra.gmra.mxu2 %vm1332_vm6, %v2107_v51  ;;  %v1034_v62 = vor.u32 %v1033_v6, %v1029_v13  ;;  %v3503_v56 = vpop.permute.xlu2 %1966  ;;  %v674_v55 = vrot.slane %v401_v52, 1  ;;  %v1860_v2 = vor.u32 %v1859_v41, %v1855_v5  ;;  %v1864_v20 = vrot.slane %v1862_v46, 1 }
  0x9e   : > { %v1200_v45 = vsel %vm627_vm0, %v1198_v12, %v1199_v18  ;;  %v1043_v36 = vshll.u32 %v3508_v59, 16  ;;  %v3522_v58 = vpack.c.b16 %v931_v49, %v931_v49  ;;  %v589_v1 = vor.u32 %v588_v39, %v584_v44 }
  0x9f   : > { %v1039_v40 = vsel %vm402_vm1, %v1034_v62, %v1038_v30  ;;  %v593_v13 = vrot.slane %v591_v37, 1  ;;  %v675_v7 = vsel %vm627_vm0, %v673_v25, %v674_v55  ;;  %v1865_v12 = vsel %vm402_vm1, %v1860_v2, %v1864_v20  ;;  %v3573_v2 = vld [vmem:[%s3094_s22 + $0xa8] sm:$0xff] }
  0xa0   : > { %607 = vrot.lane.b32.xlu1 %v486_v53, %s3043_s24  ;;  %2054 = vrot.lane.b32.xlu0 %v2014_v60, %s3042_s23  ;;  %v3528_v53 = vpack.c.b16 %v377_v17, %v377_v17  ;;  %v2814_v60 = vld [vmem:[%s3094_s22 + $0x80] sm:$0x1]  ;;  %v1041_v18 = vshrl.u32 %v3508_v59, 16  ;;  %v2015_v41 = vrot.slane %v3476_v16, 1  ;;  %v2016_v46 = vrot.slane %v3488_v14, 1 }
  0xa1   : > { %v1746_v27 = vunpack.c.l.b16 %v2814_v60  ;;  %v594_v30 = vsel %vm402_vm1, %v589_v1, %v593_v13  ;;  %v2079_v60 = vsel %vm708_vm4, %v3188_v57, %v3503_v56  ;;  %v649_v13 = vrot.slane %v3513_v50, 1  ;;  %v252_v57 = vld [vmem:[%s3094_s22 + $0x68] sm:$0x1]  ;;  %v3594_v56 = vld [vmem:[%s3094_s22 + $0x6c] sm:$0xff] }
  0xa2   : > { %v1255_v26 = vpop.permute.xlu1 %1254  ;;  %v1965_v24 = vpop.permute.xlu0 %1964  ;;  %v495_v62 = vshll.u32 %v3528_v53, 16 }
  0xa3   : > { %v1319_v38 = vsel %vm741_vm5, %v1287_v23, %v1255_v26  ;;  %1160 = vrot.lane.b32.xlu2 %v1039_v40, %s3043_s24  ;;  %v2077_v29 = vsel %vm708_vm4, %v3129_v43, %v1965_v24  ;;  %v1045_v43 = vrot.slane %v1043_v36, 1  ;;  %v1048_v23 = vshll.u32 %v3522_v58, 16  ;;  %v3544_v26 = vld [vmem:[%s3094_s22 + $0x78] sm:$0xff]  ;;  %v2826_v40 = vld [vmem:[%s3094_s22 + $0xb0] sm:$0x1] }
  0xa4   : > { %v2109_v21 = vsel %vm741_vm5, %v2077_v29, %v3440_v28  ;;  %v3553_v32 = vpack.c.b16 %v1746_v27, %v1746_v27  ;;  %v1869_v24 = vshll.u32 %v3544_v26, 16  ;;  %v497_v5 = vrot.slane %v495_v62, 1 }
  0xa5   : > { %2765 = vmatmul.msk.bf16.gmra.mxu3 %vm1332_vm6, %v1319_v38  ;;  %v3532_v9 = vpop.permute.xlu2 %599  ;;  %v1046_v28 = vor.u32 %v1045_v43, %v1041_v18  ;;  %v1867_v39 = vshrl.u32 %v3544_v26, 16  ;;  %v1750_v55 = vunpack.c.l.b16 %v2826_v40  ;;  %v1202_v29 = vrot.slane %v3522_v58, 1 }
  0xa6   : > { %v1871_v37 = vrot.slane %v1869_v24, 1  ;;  %v1874_v25 = vshll.u32 %v3553_v32, 16  ;;  %v1915_v27 = vshrl.u32 %v3573_v2, 16  ;;  %v2030_v62 = vrot.slane %v3573_v2, 1 }
  0xa7   : > { %v1766_v18 = vpack.c.b16 %v1750_v55, %v1750_v55 }
  0xa8   : > { %1240 = vrot.lane.b32.xlu1 %v1200_v45, %s3042_s23  ;;  %688 = vrot.lane.b32.xlu0 %v648_v48, %s3042_s23  ;;  %v1872_v20 = vor.u32 %v1871_v37, %v1867_v39  ;;  %v1876_v36 = vrot.slane %v1874_v25, 1 }
  0xaa   : > { %v1151_v51 = vpop.permute.xlu1 %1150  ;;  %v598_v6 = vpop.permute.xlu0 %597 }
  0xab   : > { %v712_v15 = vsel %vm708_vm4, %v3155_v8, %v598_v6  ;;  %v488_v8 = vshrl.u32 %v3513_v50, 16  ;;  %625 = vrot.lane.b32.xlu2 %v594_v30, %s3043_s24  ;;  %v1263_v45 = vsel %vm708_vm4, %v3150_v4, %v1151_v51  ;;  %v2017_v4 = vsel %vm627_vm0, %v2015_v41, %v2016_v46  ;;  %v2660_v51 = vld [vmem:[%s3094_s22 + $0x74] sm:$0x1] }
  0xac   : > { %v745_v19 = vsel %vm741_vm5, %v712_v15, %v3469_v54  ;;  %v1050_v54 = vrot.slane %v1048_v23, 1  ;;  %v650_v6 = vrot.slane %v3528_v53, 1  ;;  %v1877_v53 = vsel %vm402_vm1, %v1872_v20, %v1876_v36 }
  0xad   : > { %2773 = vmatmul.msk.bf16.gmra.mxu1 %vm1332_vm6, %v745_v19  ;;  %2907 = vmatmul.msk.bf16.gmra.mxu2 %vm1332_vm6, %v2109_v21  ;;  %v493_v52 = vor.u32 %v492_v47, %v488_v8  ;;  %v3561_v49 = vpop.permute.xlu2 %1232  ;;  %v932_v21 = vunpack.c.l.b16 %v2660_v51  ;;  %v1203_v23 = vsel %vm627_vm0, %v1201_v34, %v1202_v29  ;;  %v1922_v47 = vshll.u32 %v1766_v18, 16  ;;  %v3633_v34 = vld [vmem:[%s3094_s22 + $0xb4] sm:$0xff] }
  0xae   : > { %v1051_v44 = vsel %vm402_vm1, %v1046_v28, %v1050_v54  ;;  %v2031_v30 = vrot.slane %v1766_v18, 1  ;;  %v378_v28 = vunpack.c.l.b16 %v252_v57  ;;  %v3605_v54 = vld [vmem:[%s3094_s22 + $0x60] sm:$0xff]  ;;  %v714_v41 = vsel %vm708_vm4, %v3208_v22, %v3532_v9 }
  0xaf   : > { %v498_v14 = vsel %vm402_vm1, %v493_v52, %v497_v5  ;;  %v3607_v24 = vpack.c.b16 %v932_v21, %v932_v21  ;;  %v2018_v52 = vrot.slane %v3544_v26, 1  ;;  %v2019_v5 = vrot.slane %v3553_v32, 1 }
  0xb0   : > { %706 = vrot.lane.b32.xlu1 %v675_v7, %s3042_s23  ;;  %1976 = vrot.lane.b32.xlu0 %v1865_v12, %s3043_s24  ;;  %v1917_v7 = vshll.u32 %v3573_v2, 16  ;;  %v1924_v40 = vrot.slane %v1922_v47, 1  ;;  %v2032_v32 = vsel %vm627_vm0, %v2030_v62, %v2031_v30  ;;  %v394_v25 = vpack.c.b16 %v378_v28, %v378_v28 }
  0xb1   : > { %v1053_v9 = vshrl.u32 %v3594_v56, 16  ;;  %v1060_v55 = vshll.u32 %v3607_v24, 16  ;;  %v2020_v36 = vsel %vm627_vm0, %v2018_v52, %v2019_v5  ;;  %v1929_v18 = vshll.u32 %v3633_v34, 16 }
  0xb2   : > { %v1177_v38 = vpop.permute.xlu1 %1176  ;;  %v1231_v48 = vpop.permute.xlu0 %1230  ;;  %v1919_v8 = vrot.slane %v1917_v7, 1  ;;  %v653_v7 = vrot.slane %v394_v25, 1  ;;  %v1927_v28 = vshrl.u32 %v3633_v34, 16 }
  0xb3   : > { %v1295_v17 = vsel %vm741_vm5, %v1263_v45, %v1231_v48  ;;  %2056 = vrot.lane.b32.xlu2 %v2017_v4, %s3042_s23  ;;  %v1289_v15 = vsel %vm708_vm4, %v3171_v33, %v1177_v38  ;;  %v651_v33 = vsel %vm627_vm0, %v649_v13, %v650_v6  ;;  %v1055_v38 = vshll.u32 %v3594_v56, 16  ;;  %v2829_v45 = vld [vmem:[%s3094_s22 + $0xbc] sm:$0x1]  ;;  %v2817_v48 = vld [vmem:[%s3094_s22 + $0x8c] sm:$0x1] }
  0xb4   : > { %2753 = vmatmul.msk.bf16.gmra.mxu0 %vm1332_vm6, %v1295_v17  ;;  %v1920_v17 = vor.u32 %v1919_v8, %v1915_v27  ;;  %v1751_v29 = vunpack.c.l.b16 %v2829_v45  ;;  %v1747_v51 = vunpack.c.l.b16 %v2817_v48  ;;  %v507_v6 = vshll.u32 %v394_v25, 16 }
  0xb5   : > { %v3589_v43 = vpop.permute.xlu2 %1258  ;;  %v1057_v4 = vrot.slane %v1055_v38, 1  ;;  %v1931_v52 = vrot.slane %v1929_v18, 1 }
  0xb6   : > { %v3648_v57 = vpack.c.b16 %v1747_v51, %v1747_v51  ;;  %v2663_v51 = vld [vmem:[%s3094_s22 + $0x80] sm:$0x1] }
  0xb8   : > { %1162 = vrot.lane.b32.xlu1 %v1051_v44, %s3043_s24  ;;  %609 = vrot.lane.b32.xlu0 %v498_v14, %s3043_s24  ;;  %v502_v44 = vshll.u32 %v3605_v54, 16  ;;  %v1886_v48 = vshll.u32 %v3648_v57, 16 }
  0xba   : > { %v2047_v1 = vpop.permute.xlu1 %2046  ;;  %v1257_v12 = vpop.permute.xlu0 %1256  ;;  %v504_v13 = vrot.slane %v502_v44, 1  ;;  %v1888_v25 = vrot.slane %v1886_v48, 1 }
  0xbb   : > { %v2111_v58 = vsel %vm741_vm5, %v2079_v60, %v2047_v1  ;;  %v1321_v19 = vsel %vm741_vm5, %v1289_v15, %v1257_v12  ;;  %690 = vrot.lane.b32.xlu2 %v651_v33, %s3042_s23  ;;  %v3637_v60 = vld [vmem:[%s3094_s22 + $0x84] sm:$0xff]  ;;  %v500_v1 = vshrl.u32 %v3605_v54, 16  ;;  %v1058_v15 = vor.u32 %v1057_v4, %v1053_v9  ;;  %v3009_v4 = vld [vmem:[%s3094_s22 + $0x3c] sm:$0xff] }
  0xbc   : > { %2766 = vmatmul.msk.bf16.gmra.mxu3 %vm1332_vm6, %v1321_v19  ;;  %v1062_v12 = vrot.slane %v1060_v55, 1  ;;  %v1881_v21 = vshll.u32 %v3637_v60, 16  ;;  %v509_v33 = vrot.slane %v507_v6, 1  ;;  %v1879_v45 = vshrl.u32 %v3637_v60, 16 }
  0xbd   : > { %2908 = vmatmul.msk.bf16.gmra.mxu2 %vm1332_vm6, %v2111_v58  ;;  %v3622_v14 = vpop.permute.xlu2 %1154  ;;  %v3644_v58 = vpack.c.b16 %v1751_v29, %v1751_v29  ;;  %v1205_v9 = vrot.slane %v3607_v24, 1 }
  0xbe   : > { %v1063_v30 = vsel %vm402_vm1, %v1058_v15, %v1062_v12  ;;  %v3691_v15 = vld [vmem:[%s3094_s22 + $0x78] sm:$0xff] }
  0xbf   : > { %v1934_v5 = vshll.u32 %v3644_v58, 16 }
  0xc0   : > { %1978 = vrot.lane.b32.xlu1 %v1877_v53, %s3043_s24  ;;  %1242 = vrot.lane.b32.xlu0 %v1203_v23, %s3042_s23  ;;  %v255_v53 = vld [vmem:[%s3094_s22 + $0x74] sm:$0x1]  ;;  %v505_v23 = vor.u32 %v504_v13, %v500_v1 }
  0xc2   : > { %v681_v46 = vpop.permute.xlu1 %680  ;;  %v1153_v39 = vpop.permute.xlu0 %1152 }
  0xc3   : > { %v747_v37 = vsel %vm741_vm5, %v714_v41, %v681_v46  ;;  %v1265_v22 = vsel %vm708_vm4, %v3200_v11, %v1153_v39  ;;  %v1925_v11 = vsel %vm402_vm1, %v1920_v17, %v1924_v40  ;;  %v3663_v41 = vld [vmem:[%s3094_s22 + $0x6c] sm:$0xff]  ;;  %v379_v46 = vunpack.c.l.b16 %v255_v53  ;;  %v2832_v53 = vld [vmem:[%s3094_s22 + $0xc8] sm:$0x1] }
  0xc4   : > { %2774 = vmatmul.msk.bf16.gmra.mxu1 %vm1332_vm6, %v747_v37  ;;  %v1297_v20 = vsel %vm741_vm5, %v1265_v22, %v3561_v49  ;;  %v652_v49 = vrot.slane %v3605_v54, 1  ;;  %1986 = vrot.lane.b32.xlu2 %v1925_v11, %s3043_s24  ;;  %v510_v17 = vsel %vm402_vm1, %v505_v23, %v509_v33  ;;  %v1936_v40 = vrot.slane %v1934_v5, 1 }
  0xc5   : > { %2754 = vmatmul.msk.bf16.gmra.mxu0 %vm1332_vm6, %v1297_v20  ;;  %v3652_v8 = vpop.permute.xlu2 %619  ;;  %v3671_v44 = vpack.c.b16 %v379_v46, %v379_v46  ;;  %v514_v39 = vshll.u32 %v3663_v41, 16  ;;  %v1204_v22 = vrot.slane %v3594_v56, 1  ;;  %v512_v1 = vshrl.u32 %v3663_v41, 16  ;;  %v3713_v46 = vld [vmem:[%s3094_s22 + $0xc0] sm:$0xff] }
  0xc6   : > { %v654_v62 = vsel %vm627_vm0, %v652_v49, %v653_v7  ;;  %v933_v7 = vunpack.c.l.b16 %v2663_v51  ;;  %v1267_v23 = vsel %vm708_vm4, %v3257_v31, %v3622_v14  ;;  %v2820_v14 = vld [vmem:[%s3094_s22 + $0x98] sm:$0x1]  ;;  %v2666_v51 = vld [vmem:[%s3094_s22 + $0x8c] sm:$0x1] }
  0xc7   : > { %v516_v13 = vrot.slane %v514_v39, 1  ;;  %v519_v24 = vshll.u32 %v3671_v44, 16  ;;  %v1206_v49 = vsel %vm627_vm0, %v1204_v22, %v1205_v9  ;;  %v1207_v39 = vrot.slane %v3691_v15, 1 }
  0xc8   : > { %2066 = vrot.lane.b32.xlu1 %v2032_v32, %s3042_s23  ;;  %2058 = vrot.lane.b32.xlu0 %v2020_v36, %s3042_s23  ;;  %v1941_v9 = vshll.u32 %v3713_v46, 16 }
  0xc9   : > { %v517_v12 = vor.u32 %v516_v13, %v512_v1  ;;  %v521_v18 = vrot.slane %v519_v24, 1 }
  0xca   : > { %v1969_v19 = vpop.permute.xlu1 %1968  ;;  %v1179_v27 = vpop.permute.xlu0 %1178 }
  0xcb   : > { %v1291_v47 = vsel %vm708_vm4, %v3226_v42, %v1179_v27  ;;  %v1883_v42 = vrot.slane %v1881_v21, 1  ;;  %v2081_v55 = vsel %vm708_vm4, %v3009_v4, %v1969_v19  ;;  %v2033_v19 = vrot.slane %v3633_v34, 1 }
  0xcc   : > { %v1323_v38 = vsel %vm741_vm5, %v1291_v47, %v3589_v43  ;;  %v1932_v43 = vor.u32 %v1931_v52, %v1927_v28  ;;  %611 = vrot.lane.b32.xlu2 %v510_v17, %s3043_s24  ;;  %v2034_v21 = vrot.slane %v3644_v58, 1  ;;  %v2021_v27 = vrot.slane %v3637_v60, 1 }
  0xcd   : > { %2767 = vmatmul.msk.bf16.gmra.mxu3 %vm1332_vm6, %v1323_v38  ;;  %v1884_v32 = vor.u32 %v1883_v42, %v1879_v45  ;;  %v3679_v36 = vpop.permute.xlu2 %2050  ;;  %v2022_v47 = vrot.slane %v3648_v57, 1  ;;  %v949_v52 = vpack.c.b16 %v933_v7, %v933_v7  ;;  %v1752_v57 = vunpack.c.l.b16 %v2832_v53 }
  0xce   : > { %v1937_v11 = vsel %vm402_vm1, %v1932_v43, %v1936_v40  ;;  %v522_v45 = vsel %vm402_vm1, %v517_v12, %v521_v18  ;;  %v2035_v42 = vsel %vm627_vm0, %v2033_v19, %v2034_v21  ;;  %v1065_v17 = vshrl.u32 %v3691_v15, 16  ;;  %v3011_v18 = vld [vmem:[%s3094_s22 + $0x48] sm:$0xff] }
  0xcf   : > { %v1889_v6 = vsel %vm402_vm1, %v1884_v32, %v1888_v25  ;;  %v2023_v48 = vsel %vm627_vm0, %v2021_v27, %v2022_v47  ;;  %v1072_v40 = vshll.u32 %v949_v52, 16  ;;  %v1748_v32 = vunpack.c.l.b16 %v2820_v14  ;;  %v3723_v25 = vld [vmem:[%s3094_s22 + $0x90] sm:$0xff] }
  0xd0   : > { %692 = vrot.lane.b32.xlu1 %v654_v62, %s3042_s23  ;;  %1164 = vrot.lane.b32.xlu0 %v1063_v30, %s3043_s24  ;;  %v1067_v62 = vshll.u32 %v3691_v15, 16  ;;  %v3010_v30 = vld [vmem:[%s3094_s22 + $0x24] sm:$0xff]  ;;  %v3725_v22 = vpack.c.b16 %v1752_v57, %v1752_v57  ;;  %v655_v4 = vrot.slane %v3663_v41, 1  ;;  %v1893_v24 = vshll.u32 %v3723_v25, 16 }
  0xd1   : > { %v1074_v13 = vrot.slane %v1072_v40, 1  ;;  %v1764_v7 = vpack.c.b16 %v1748_v32, %v1748_v32  ;;  %v1943_v19 = vrot.slane %v1941_v9, 1  ;;  %v934_v27 = vunpack.c.l.b16 %v2666_v51  ;;  %v3012_v9 = vld [vmem:[%s3094_s22 + $0x30] sm:$0xff] }
  0xd2   : > { %v602_v37 = vpop.permute.xlu1 %601  ;;  %v2049_v20 = vpop.permute.xlu0 %2048  ;;  %v1069_v43 = vrot.slane %v1067_v62, 1  ;;  %v1946_v21 = vshll.u32 %v3725_v22, 16  ;;  %v3755_v62 = vld [vmem:[%s3094_s22 + $0x78] sm:$0xff] }
  0xd3   : > { %v2113_v29 = vsel %vm741_vm5, %v2081_v55, %v2049_v20  ;;  %v716_v28 = vsel %vm708_vm4, %v3010_v30, %v602_v37  ;;  %v1208_v37 = vrot.slane %v949_v52, 1  ;;  %v656_v55 = vrot.slane %v3671_v44, 1 }
  0xd4   : > { %2909 = vmatmul.msk.bf16.gmra.mxu2 %vm1332_vm6, %v2113_v29  ;;  %1244 = vrot.lane.b32.xlu2 %v1206_v49, %s3042_s23  ;;  %v734_v20 = vsel %vm708_vm4, %v3278_v61, %v3652_v8  ;;  %v1070_v1 = vor.u32 %v1069_v43, %v1065_v17  ;;  %v1939_v8 = vshrl.u32 %v3713_v46, 16  ;;  %v2025_v52 = vrot.slane %v1764_v7, 1  ;;  %v2823_v43 = vld [vmem:[%s3094_s22 + $0xa4] sm:$0x1] }
  0xd5   : > { %v3707_v5 = vpop.permute.xlu2 %684  ;;  %v1209_v44 = vsel %vm627_vm0, %v1207_v39, %v1208_v37  ;;  %v1948_v14 = vrot.slane %v1946_v21, 1  ;;  %v3762_v57 = vpack.c.b16 %v934_v27, %v934_v27  ;;  %v526_v17 = vshll.u32 %v3755_v62, 16 }
  0xd6   : > { %v1075_v30 = vsel %vm402_vm1, %v1070_v1, %v1074_v13  ;;  %v3781_v13 = vld [vmem:[%s3094_s22 + $0x9c] sm:$0xff]  ;;  %v2037_v27 = vrot.slane %v3725_v22, 1 }
  0xd7   : > { %v1084_v1 = vshll.u32 %v3762_v57, 16 }
  0xd8   : > { %1988 = vrot.lane.b32.xlu1 %v1937_v11, %s3043_s24  ;;  %1980 = vrot.lane.b32.xlu0 %v1889_v6, %s3043_s24  ;;  %v258_v11 = vld [vmem:[%s3094_s22 + $0x80] sm:$0x1] }
  0xd9   : > { %v380_v47 = vunpack.c.l.b16 %v258_v11 }
  0xda   : > { %v1235_v33 = vpop.permute.xlu1 %1234  ;;  %v683_v58 = vpop.permute.xlu0 %682 }
  0xdb   : > { %v1299_v38 = vsel %vm741_vm5, %v1267_v23, %v1235_v33  ;;  %v749_v31 = vsel %vm741_vm5, %v716_v28, %v683_v58  ;;  %v657_v23 = vsel %vm627_vm0, %v655_v4, %v656_v55  ;;  %v3751_v33 = vld [vmem:[%s3094_s22 + $0x84] sm:$0xff]  ;;  %v1891_v28 = vshrl.u32 %v3723_v25, 16 }
  0xdc   : > { %2755 = vmatmul.msk.bf16.gmra.mxu0 %vm1332_vm6, %v1299_v38  ;;  %2775 = vmatmul.msk.bf16.gmra.mxu1 %vm1332_vm6, %v749_v31  ;;  %v1895_v58 = vrot.slane %v1893_v24, 1  ;;  %v1898_v38 = vshll.u32 %v1764_v7, 16  ;;  %v1944_v31 = vor.u32 %v1943_v19, %v1939_v8  ;;  %v1749_v24 = vunpack.c.l.b16 %v2823_v43 }
  0xdd   : > { %2060 = vrot.lane.b32.xlu2 %v2023_v48, %s3042_s23  ;;  %v3740_v12 = vpop.permute.xlu2 %1972  ;;  %v3766_v48 = vpack.c.b16 %v380_v47, %v380_v47  ;;  %v1905_v8 = vshll.u32 %v3781_v13, 16  ;;  %v3013_v47 = vld [vmem:[%s3094_s22 + $0x3c] sm:$0xff] }
  0xde   : > { %v1896_v40 = vor.u32 %v1895_v58, %v1891_v28  ;;  %v1900_v39 = vrot.slane %v1898_v38, 1 }
  0xe0   : > { %613 = vrot.lane.b32.xlu1 %v522_v45, %s3043_s24  ;;  %2068 = vrot.lane.b32.xlu0 %v2035_v42, %s3042_s23  ;;  %v1079_v45 = vshll.u32 %v3751_v33, 16  ;;  %v1901_v7 = vsel %vm402_vm1, %v1896_v40, %v1900_v39 }
  0xe2   : > { %v701_v29 = vpop.permute.xlu1 %700  ;;  %v1971_v49 = vpop.permute.xlu0 %1970  ;;  %v1081_v11 = vrot.slane %v1079_v45, 1  ;;  %v2835_v45 = vld [vmem:[%s3094_s22 + $0xd4] sm:$0x1] }
  0xe3   : > { %v767_v6 = vsel %vm741_vm5, %v734_v20, %v701_v29  ;;  %v2083_v61 = vsel %vm708_vm4, %v3011_v18, %v1971_v49  ;;  %v1949_v20 = vsel %vm402_vm1, %v1944_v31, %v1948_v14  ;;  %v1077_v29 = vshrl.u32 %v3751_v33, 16 }
  0xe4   : > { %2784 = vmatmul.msk.bf16.vlgmr.msrb.gmra.mxu3 %vm1332_vm6, %v767_v6  ;;  %v2115_v53 = vsel %vm741_vm5, %v2083_v61, %v3679_v36  ;;  %v2024_v36 = vrot.slane %v3723_v25, 1  ;;  %v524_v6 = vshrl.u32 %v3755_v62, 16  ;;  %v528_v49 = vrot.slane %v526_v17, 1  ;;  %v3809_v17 = vld [vmem:[%s3094_s22 + $0xcc] sm:$0xff] }
  0xe5   : > { %2910 = vmatmul.msk.bf16.gmra.mxu2 %vm1332_vm6, %v2115_v53  ;;  %1166 = vrot.lane.b32.xlu2 %v1075_v30, %s3043_s24  ;;  %v3770_v32 = vpop.permute.xlu2 %605  ;;  %v1086_v18 = vrot.slane %v1084_v1, 1  ;;  %v3789_v61 = vpack.c.b16 %v1749_v24, %v1749_v24  ;;  %v1907_v31 = vrot.slane %v1905_v8, 1  ;;  %v1753_v43 = vunpack.c.l.b16 %v2835_v45  ;;  %v3014_v1 = vld [vmem:[%s3094_s22 + $0x9c] sm:$0xff] }
  0xe6   : > { %v2026_v55 = vsel %vm627_vm0, %v2024_v36, %v2025_v52  ;;  %v529_v21 = vor.u32 %v528_v49, %v524_v6  ;;  %v1903_v52 = vshrl.u32 %v3781_v13, 16 }
  0xe7   : > { %v1910_v14 = vshll.u32 %v3789_v61, 16 }
  0xe8   : > { %1246 = vrot.lane.b32.xlu1 %v1209_v44, %s3042_s23  ;;  %694 = vrot.lane.b32.xlu0 %v657_v23, %s3042_s23  ;;  %v531_v44 = vshll.u32 %v3766_v48, 16  ;;  %v2036_v23 = vrot.slane %v3713_v46, 1  ;;  %v1908_v40 = vor.u32 %v1907_v31, %v1903_v52  ;;  %v720_v31 = vsel %vm708_vm4, %v3381_v3, %v3770_v32 }
  0xe9   : > { %v1912_v39 = vrot.slane %v1910_v14, 1 }
  0xea   : > { %v1157_v42 = vpop.permute.xlu1 %1156  ;;  %v604_v37 = vpop.permute.xlu0 %603  ;;  %v533_v53 = vrot.slane %v531_v44, 1 }
  0xeb   : > { %v718_v4 = vsel %vm708_vm4, %v3012_v9, %v604_v37  ;;  %v1269_v30 = vsel %vm708_vm4, %v3013_v47, %v1157_v42  ;;  %v2038_v42 = vsel %vm627_vm0, %v2036_v23, %v2037_v27  ;;  %v1210_v37 = vrot.slane %v3751_v33, 1 }
  0xec   : > { %v751_v51 = vsel %vm741_vm5, %v718_v4, %v3707_v5  ;;  %v1082_v5 = vor.u32 %v1081_v11, %v1077_v29  ;;  %v534_v22 = vsel %vm402_vm1, %v529_v21, %v533_v53  ;;  %v1211_v9 = vrot.slane %v3762_v57, 1 }
  0xed   : > { %2776 = vmatmul.msk.bf16.gmra.mxu1 %vm1332_vm6, %v751_v51  ;;  %1982 = vrot.lane.b32.xlu2 %v1901_v7, %s3043_s24  ;;  %v3797_v58 = vpop.permute.xlu2 %1238  ;;  %v2085_v4 = vsel %vm708_vm4, %v3355_v35, %v3740_v12  ;;  %v658_v29 = vrot.slane %v3755_v62, 1  ;;  %v659_v51 = vrot.slane %v3766_v48, 1  ;;  %v1953_v11 = vshll.u32 %v3809_v17, 16  ;;  %v261_v7 = vld [vmem:[%s3094_s22 + $0x8c] sm:$0x1] }
  0xee   : > { %v1087_v36 = vsel %vm402_vm1, %v1082_v5, %v1086_v18  ;;  %v1769_v12 = vpack.c.b16 %v1753_v43, %v1753_v43  ;;  %v1913_v48 = vsel %vm402_vm1, %v1908_v40, %v1912_v39  ;;  %v1212_v44 = vsel %vm627_vm0, %v1210_v37, %v1211_v9  ;;  %v3834_v5 = vld [vmem:[%s3094_s22 + $0x90] sm:$0xff]  ;;  %v3015_v39 = vld [vmem:[%s3094_s22 + $0x48] sm:$0xff] }
  0xef   : > { %v660_v8 = vsel %vm627_vm0, %v658_v29, %v659_v51  ;;  %v1955_v21 = vrot.slane %v1953_v11, 1  ;;  %v2039_v23 = vrot.slane %v3809_v17, 1  ;;  %v2027_v47 = vrot.slane %v3781_v13, 1 }
  0xf0   : > { %2062 = vrot.lane.b32.xlu1 %v2026_v55, %s3042_s23  ;;  %1990 = vrot.lane.b32.xlu0 %v1949_v20, %s3043_s24  ;;  %v2669_v20 = vld [vmem:[%s3094_s22 + $0x98] sm:$0x1]  ;;  %v1958_v53 = vshll.u32 %v1769_v12, 16  ;;  %v2040_v27 = vrot.slane %v1769_v12, 1  ;;  %v1091_v52 = vshll.u32 %v3834_v5, 16  ;;  %v1089_v32 = vshrl.u32 %v3834_v5, 16 }
  0xf1   : > { %v935_v18 = vunpack.c.l.b16 %v2669_v20 }
  0xf2   : > { %v622_v19 = vpop.permute.xlu1 %621  ;;  %v1237_v28 = vpop.permute.xlu0 %1236  ;;  %v2041_v9 = vsel %vm627_vm0, %v2039_v23, %v2040_v27  ;;  %v1093_v20 = vrot.slane %v1091_v52, 1  ;;  %v3017_v52 = vld [vmem:[%s3094_s22 + $0x60] sm:$0xff] }
  0xf3   : > { %v1301_v38 = vsel %vm741_vm5, %v1269_v30, %v1237_v28  ;;  %v736_v24 = vsel %vm708_vm4, %v3014_v1, %v622_v19  ;;  %v1951_v19 = vshrl.u32 %v3809_v17, 16  ;;  %v2028_v30 = vrot.slane %v3789_v61, 1  ;;  %v3843_v28 = vld [vmem:[%s3094_s22 + $0x84] sm:$0xff] }
  0xf4   : > { %2756 = vmatmul.msk.bf16.gmra.mxu0 %vm1332_vm6, %v1301_v38  ;;  %v381_v38 = vunpack.c.l.b16 %v261_v7  ;;  %v536_v11 = vshrl.u32 %v3843_v28, 16 }
  0xf5   : > { %2070 = vrot.lane.b32.xlu2 %v2038_v42, %s3042_s23  ;;  %v3825_v49 = vpop.permute.xlu2 %704  ;;  %v1956_v45 = vor.u32 %v1955_v21, %v1951_v19  ;;  %v538_v42 = vshll.u32 %v3843_v28, 16 }
  0xf7   : > { %v540_v1 = vrot.slane %v538_v42, 1 }
  0xf8   : > { %1168 = vrot.lane.b32.xlu1 %v1087_v36, %s3043_s24  ;;  %615 = vrot.lane.b32.xlu0 %v534_v22, %s3043_s24  ;;  %v951_v36 = vpack.c.b16 %v935_v18, %v935_v18  ;;  %v1960_v22 = vrot.slane %v1958_v53, 1 }
  0xfa   : > { %v2053_v55 = vpop.permute.xlu1 %2052  ;;  %v703_v57 = vpop.permute.xlu0 %702  ;;  %v1096_v29 = vshll.u32 %v951_v36, 16  ;;  %v1961_v51 = vsel %vm402_vm1, %v1956_v45, %v1960_v22 }
  0xfb   : > { %v2117_v6 = vsel %vm741_vm5, %v2085_v4, %v2053_v55  ;;  %v769_v35 = vsel %vm741_vm5, %v736_v24, %v703_v57  ;;  %v2029_v4 = vsel %vm627_vm0, %v2027_v47, %v2028_v30  ;;  %v397_v55 = vpack.c.b16 %v381_v38, %v381_v38 }
  0xfc   : > { %2911 = vmatmul.msk.bf16.gmra.mxu2 %vm1332_vm6, %v2117_v6  ;;  %2785 = vmatmul.msk.bf16.gmra.mxu3 %vm1332_vm6, %v769_v35  ;;  %v661_v57 = vrot.slane %v3843_v28, 1  ;;  %v1094_v35 = vor.u32 %v1093_v20, %v1089_v32  ;;  %v1098_v12 = vrot.slane %v1096_v29, 1  ;;  %v1213_v30 = vrot.slane %v3834_v5, 1  ;;  %v3904_v20 = vld [vmem:[%s4178_s3] ss:$0 sm:$0xff] }
  0xfd   : > { %696 = vrot.lane.b32.xlu2 %v660_v8, %s3042_s23  ;;  %v1161_v40 = vpop.permute.xlu2 %1160  ;;  %v543_v24 = vshll.u32 %v397_v55, 16  ;;  %v3016_v8 = vld [vmem:[%s3094_s22 + $0xa8] sm:$0xff]  ;;  %v1214_v38 = vrot.slane %v951_v36, 1  ;;  %s3920_s22 = scalar_lea.vmem %s4179_s4, %s2924_s19 }
  0xfe   : > { %v1099_v23 = vsel %vm402_vm1, %v1094_v35, %v1098_v12  ;;  %v1273_v42 = vsel %vm708_vm4, %v3455_v0, %v1161_v40  ;;  %v3897_v0 = vld [vmem:[%s4177_s2] ss:$0 sm:$0xff] }
  0xff   : > { %v1215_v22 = vsel %vm627_vm0, %v1213_v30, %v1214_v38 }
 0x100   : > { %1984 = vrot.lane.b32.xlu1 %v1913_v48, %s3043_s24  ;;  %1248 = vrot.lane.b32.xlu0 %v1212_v44, %s3042_s23  ;;  %v541_v48 = vor.u32 %v540_v1, %v536_v11  ;;  %v545_v44 = vrot.slane %v543_v24, 1 }
 0x102   : > { %v687_v14 = vpop.permute.xlu1 %686  ;;  %v1159_v61 = vpop.permute.xlu0 %1158  ;;  %v546_v27 = vsel %vm402_vm1, %v541_v48, %v545_v44 }
 0x103   : > { %v753_v43 = vsel %vm741_vm5, %v720_v31, %v687_v14  ;;  %v1271_v37 = vsel %vm708_vm4, %v3015_v39, %v1159_v61 }
 0x104   : > { %2777 = vmatmul.msk.bf16.gmra.mxu1 %vm1332_vm6, %v753_v43  ;;  %v1303_v3 = vsel %vm741_vm5, %v1271_v37, %v3797_v58  ;;  %v662_v58 = vrot.slane %v397_v55, 1 }
 0x105   : > { %2757 = vmatmul.msk.bf16.gmra.mxu0 %vm1332_vm6, %v1303_v3  ;;  %1992 = vrot.lane.b32.xlu2 %v1961_v51, %s3043_s24  ;;  %v626_v18 = vpop.permute.xlu2 %625 }
 0x106   : > { %v663_v53 = vsel %vm627_vm0, %v661_v57, %v662_v58 }
 0x108   : > { %2072 = vrot.lane.b32.xlu1 %v2041_v9, %s3042_s23  ;;  %2064 = vrot.lane.b32.xlu0 %v2029_v4, %s3042_s23 }
 0x109   : > { %v1510_v55 = vpop.f32.mrf.mxu1 }
 0x10a   : > { %v1975_v6 = vpop.permute.xlu1 %1974  ;;  %v624_v7 = vpop.permute.xlu0 %623 }
 0x10b   : > { %v738_v19 = vsel %vm708_vm4, %v3016_v8, %v624_v7 }
 0x10c   : > { %v771_v21 = vsel %vm741_vm5, %v738_v19, %v3825_v49  ;;  %v2087_v49 = vsel %vm708_vm4, %v3017_v52, %v1975_v6 }
 0x10d   : > { %2786 = vmatmul.msk.bf16.gmra.mxu3 %vm1332_vm6, %v771_v21  ;;  %617 = vrot.lane.b32.xlu2 %v546_v27, %s3043_s24  ;;  %v2057_v14 = vpop.permute.xlu2 %2056 }
 0x110   : > { %698 = vrot.lane.b32.xlu1 %v663_v53, %s3042_s23  ;;  %1170 = vrot.lane.b32.xlu0 %v1099_v23, %s3043_s24 }
 0x111   : > { %v1512_v35 = vpop.f32.mrf.mxu1 }
 0x112   : > { %v608_v47 = vpop.permute.xlu1 %607  ;;  %v2055_v31 = vpop.permute.xlu0 %2054 }
 0x113   : > { %v2119_v45 = vsel %vm741_vm5, %v2087_v49, %v2055_v31  ;;  %v722_v36 = vsel %vm708_vm4, %v3427_v63, %v608_v47  ;;  %v740_v63 = vsel %vm708_vm4, %v3486_v10, %v626_v18 }
 0x114   : > { %2912 = vmatmul.msk.bf16.gmra.mxu2 %vm1332_vm6, %v2119_v45 }
 0x115   : > { %1250 = vrot.lane.b32.xlu2 %v1215_v22, %s3042_s23  ;;  %v691_v9 = vpop.permute.xlu2 %690 }
 0x118   : > { %v3915_v12 = vpop.f32.mrf.mxu3 }
 0x119   : > { %v1381_v61 = vpop.f32.mrf.mxu0 }
 0x11a   : > { %v1241_v43 = vpop.permute.xlu1 %1240  ;;  %v689_v39 = vpop.permute.xlu0 %688  ;;  %v1511_v3 = vadd.f32 %v1510_v55, %v1381_v61 }
 0x11b   : > { %v1305_v37 = vsel %vm741_vm5, %v1273_v42, %v1241_v43  ;;  %v755_v4 = vsel %vm741_vm5, %v722_v36, %v689_v39 }
 0x11c   : > { %2758 = vmatmul.msk.bf16.gmra.mxu0 %vm1332_vm6, %v1305_v37  ;;  %2778 = vmatmul.msk.bf16.gmra.mxu1 %vm1332_vm6, %v755_v4 }
 0x11e   : > { %v1987_v1 = vpop.permute.xlu2 %1986 }
 0x120   : > { %v2190_v40 = vpop.f32.mrf.mxu2  ;;  %v3930_v52 = vpop.f32.mrf.mxu3 }
 0x121   : > { %v2270_v32 = vadd.f32 %v2190_v40, %v1511_v3  ;;  %v1383_v58 = vpop.f32.mrf.mxu0 }
 0x122   : > { %v707_v29 = vpop.permute.xlu1 %706  ;;  %v1977_v51 = vpop.permute.xlu0 %1976  ;;  %v1513_v44 = vadd.f32 %v1512_v35, %v1383_v58 }
 0x123   : > { %v773_v11 = vsel %vm741_vm5, %v740_v63, %v707_v29  ;;  %v2306_v24 = vmul.f32 %v3897_v0, %v2270_v32  ;;  %v2089_v57 = vsel %vm708_vm4, %v3476_v16, %v1977_v51 }
 0x124   : > { %2787 = vmatmul.msk.bf16.gmra.mxu3 %vm1332_vm6, %v773_v11  ;;  %v2121_v10 = vsel %vm741_vm5, %v2089_v57, %v2057_v14 }
 0x125   : > { %v2342_v6 = vadd.f32 %v3904_v20, %v2306_v24  ;;  %2913 = vmatmul.msk.bf16.gmra.mxu2 %vm1332_vm6, %v2121_v10 }
 0x126   : > { %v612_v23 = vpop.permute.xlu2 %611 }
 0x127   : > { %v2374_v48 = vmax.f32 %v2342_v6, 0.0  ;;  %v726_v6 = vsel %vm708_vm4, %v3605_v54, %v612_v23 }
 0x128   : > { %v2192_v16 = vpop.f32.mrf.mxu2  ;;  %v3942_v40 = vpop.f32.mrf.mxu3 }
 0x129   : > { %v2406_v7 = vpack.c.bf16 %v2374_v48, %v2374_v48  ;;  %v2271_v18 = vadd.f32 %v2192_v16, %v1513_v44 }
 0x12a   : > { %v1163_v8 = vpop.permute.xlu1 %1162  ;;  %v610_v19 = vpop.permute.xlu0 %609 }
 0x12b   : > { %2439 = vst.msk [vmem:[%s3920_s22] sm:$0xf] %vm2438_vm7, %v2406_v7  ;;  %v2307_v21 = vmul.f32 %v3897_v0, %v2271_v18  ;;  %v724_v53 = vsel %vm708_vm4, %v3513_v50, %v610_v19  ;;  %v1515_v30 = vpop.f32.mrf.mxu1  ;;  %v1275_v22 = vsel %vm708_vm4, %v3508_v59, %v1163_v8  ;;  %v2099_v59 = vsel %vm708_vm4, %v3573_v2, %v1987_v1 }
 0x12c   : > { %v757_v27 = vsel %vm741_vm5, %v724_v53, %v691_v9 }
 0x12d   : > { %v2343_v47 = vadd.f32 %v3904_v20, %v2307_v21  ;;  %2779 = vmatmul.msk.bf16.gmra.mxu1 %vm1332_vm6, %v757_v27 }
 0x12e   : > { %v1245_v43 = vpop.permute.xlu2 %1244 }
 0x12f   : > { %v2375_v38 = vmax.f32 %v2343_v47, 0.0 }
 0x130   : > { %v2195_v49 = vpop.f32.mrf.mxu2  ;;  %v3960_v53 = vpop.f32.mrf.mxu3 }
 0x131   : > { %v2407_v31 = vpack.c.bf16 %v2375_v38, %v2375_v38  ;;  %v1386_v14 = vpop.f32.mrf.mxu0 }
 0x132   : > { %v1979_v45 = vpop.permute.xlu1 %1978  ;;  %v1516_v42 = vadd.f32 %v1515_v30, %v1386_v14  ;;  %v1243_v50 = vpop.permute.xlu0 %1242 }
 0x133   : > { %2440 = vst.msk [vmem:[%s3920_s22 + $0x4] sm:$0xf] %vm2438_vm7, %v2407_v31  ;;  %v1307_v61 = vsel %vm741_vm5, %v1275_v22, %v1243_v50  ;;  %v1517_v9 = vpop.f32.mrf.mxu1  ;;  %v2091_v32 = vsel %vm708_vm4, %v3544_v26, %v1979_v45 }
 0x134   : > { %v2272_v36 = vadd.f32 %v2195_v49, %v1516_v42  ;;  %2759 = vmatmul.msk.bf16.gmra.mxu0 %vm1332_vm6, %v1307_v61 }
 0x136   : > { %v2308_v39 = vmul.f32 %v3897_v0, %v2272_v36 }
 0x137   : > { %v2061_v57 = vpop.permute.xlu2 %2060 }
 0x138   : > { %v2344_v37 = vadd.f32 %v3904_v20, %v2308_v39  ;;  %v2197_v4 = vpop.f32.mrf.mxu2 }
 0x139   : > { %v1388_v55 = vpop.f32.mrf.mxu0 }
 0x13a   : > { %v2067_v3 = vpop.permute.xlu1 %2066  ;;  %v2376_v63 = vmax.f32 %v2344_v37, 0.0  ;;  %v1518_v29 = vadd.f32 %v1517_v9, %v1388_v55  ;;  %v2059_v11 = vpop.permute.xlu0 %2058 }
 0x13b   : > { %v2131_v51 = vsel %vm741_vm5, %v2099_v59, %v2067_v3  ;;  %v2123_v24 = vsel %vm741_vm5, %v2091_v32, %v2059_v11 }
 0x13c   : > { %2918 = vmatmul.msk.bf16.vlgmr.msra.gmra.mxu3 %vm1332_vm6, %v2131_v51  ;;  %v2408_v58 = vpack.c.bf16 %v2376_v63, %v2376_v63  ;;  %v2273_v10 = vadd.f32 %v2197_v4, %v1518_v29  ;;  %2914 = vmatmul.msk.bf16.gmra.mxu2 %vm1332_vm6, %v2123_v24 }
 0x13e   : > { %2441 = vst.msk [vmem:[%s3920_s22 + $0x8] sm:$0xf] %vm2438_vm7, %v2408_v58  ;;  %v2309_v2 = vmul.f32 %v3897_v0, %v2273_v10 }
 0x13f   : > { %v1167_v21 = vpop.permute.xlu2 %1166  ;;  %v3970_v42 = vpop.f32.mrf.mxu3 }
 0x140   : > { %v2345_v1 = vadd.f32 %v3904_v20, %v2309_v2  ;;  %v2200_v35 = vpop.f32.mrf.mxu2  ;;  %v1279_v24 = vsel %vm708_vm4, %v3691_v15, %v1167_v21 }
 0x141   : > { %v1520_v26 = vpop.f32.mrf.mxu1 }
 0x142   : > { %v693_v48 = vpop.permute.xlu1 %692  ;;  %v2377_v44 = vmax.f32 %v2345_v1, 0.0  ;;  %v1165_v16 = vpop.permute.xlu0 %1164 }
 0x143   : > { %v1391_v7 = vpop.f32.mrf.mxu0  ;;  %v759_v18 = vsel %vm741_vm5, %v726_v6, %v693_v48  ;;  %v1277_v8 = vsel %vm708_vm4, %v3594_v56, %v1165_v16 }
 0x144   : > { %v1521_v19 = vadd.f32 %v1520_v26, %v1391_v7  ;;  %2780 = vmatmul.msk.bf16.gmra.mxu1 %vm1332_vm6, %v759_v18  ;;  %v2409_v27 = vpack.c.bf16 %v2377_v44, %v2377_v44  ;;  %v1309_v54 = vsel %vm741_vm5, %v1277_v8, %v1245_v43 }
 0x145   : > { %2760 = vmatmul.msk.bf16.gmra.mxu0 %vm1332_vm6, %v1309_v54 }
 0x146   : > { %v2274_v23 = vadd.f32 %v2200_v35, %v1521_v19  ;;  %2442 = vst.msk [vmem:[%s3920_s22 + $0xc] sm:$0xf] %vm2438_vm7, %v2409_v27 }
 0x147   : > { %v1983_v39 = vpop.permute.xlu2 %1982  ;;  %v3982_v32 = vpop.f32.mrf.mxu3 }
 0x148   : > { %v2310_v47 = vmul.f32 %v3897_v0, %v2274_v23  ;;  %v2202_v50 = vpop.f32.mrf.mxu2 }
 0x149   : > { %v1522_v30 = vpop.f32.mrf.mxu1 }
 0x14a   : > { %v2346_v56 = vadd.f32 %v3904_v20, %v2310_v47  ;;  %v1989_v38 = vpop.permute.xlu1 %1988  ;;  %v1981_v49 = vpop.permute.xlu0 %1980 }
 0x14b   : > { %v1393_v31 = vpop.f32.mrf.mxu0  ;;  %v2093_v45 = vsel %vm708_vm4, %v3637_v60, %v1981_v49  ;;  %v2101_v60 = vsel %vm708_vm4, %v3633_v34, %v1989_v38 }
 0x14c   : > { %v2378_v14 = vmax.f32 %v2346_v56, 0.0  ;;  %v1523_v22 = vadd.f32 %v1522_v30, %v1393_v31  ;;  %v2125_v61 = vsel %vm741_vm5, %v2093_v45, %v2061_v57 }
 0x14d   : > { %2915 = vmatmul.msk.bf16.gmra.mxu2 %vm1332_vm6, %v2125_v61 }
 0x14e   : > { %v2410_v43 = vpack.c.bf16 %v2378_v14, %v2378_v14  ;;  %v2275_v36 = vadd.f32 %v2202_v50, %v1523_v22 }
 0x14f   : > { %v2071_v29 = vpop.permute.xlu2 %2070 }
 0x150   : > { %2443 = vst.msk [vmem:[%s3920_s22 + $0x10] sm:$0xf] %vm2438_vm7, %v2410_v43  ;;  %v2311_v37 = vmul.f32 %v3897_v0, %v2275_v36  ;;  %v3995_v48 = vpop.f32.mrf.mxu3 }
 0x152   : > { %v2347_v9 = vadd.f32 %v3904_v20, %v2311_v37  ;;  %v614_v4 = vpop.permute.xlu1 %613  ;;  %v2069_v59 = vpop.permute.xlu0 %2068 }
 0x153   : > { %v2133_v3 = vsel %vm741_vm5, %v2101_v60, %v2069_v59  ;;  %v728_v34 = vsel %vm708_vm4, %v3663_v41, %v614_v4  ;;  %v2095_v41 = vsel %vm708_vm4, %v3723_v25, %v1983_v39 }
 0x154   : > { %v2379_v55 = vmax.f32 %v2347_v9, 0.0  ;;  %2919 = vmatmul.msk.bf16.gmra.mxu3 %vm1332_vm6, %v2133_v3 }
 0x156   : > { %v2411_v63 = vpack.c.bf16 %v2379_v55, %v2379_v55 }
 0x157   : > { %v2205_v51 = vpop.f32.mrf.mxu2  ;;  %v697_v27 = vpop.permute.xlu2 %696 }
 0x158   : > { %2444 = vst.msk [vmem:[%s3920_s22 + $0x14] sm:$0xf] %vm2438_vm7, %v2411_v63  ;;  %v4012_v45 = vpop.f32.mrf.mxu3 }
 0x159   : > { %v1396_v11 = vpop.f32.mrf.mxu0  ;;  %v1525_v57 = vpop.f32.mrf.mxu1 }
 0x15a   : > { %v1247_v58 = vpop.permute.xlu1 %1246  ;;  %v1526_v10 = vadd.f32 %v1525_v57, %v1396_v11  ;;  %v695_v2 = vpop.permute.xlu0 %694 }
 0x15b   : > { %v1311_v1 = vsel %vm741_vm5, %v1279_v24, %v1247_v58  ;;  %v761_v26 = vsel %vm741_vm5, %v728_v34, %v695_v2 }
 0x15c   : > { %2761 = vmatmul.msk.bf16.gmra.mxu0 %vm1332_vm6, %v1311_v1  ;;  %v2276_v6 = vadd.f32 %v2205_v51, %v1526_v10  ;;  %2781 = vmatmul.msk.bf16.gmra.mxu1 %vm1332_vm6, %v761_v26 }
 0x15e   : > { %v2312_v35 = vmul.f32 %v3897_v0, %v2276_v6 }
 0x15f   : > { %v2207_v54 = vpop.f32.mrf.mxu2  ;;  %v1993_v61 = vpop.permute.xlu2 %1992 }
 0x160   : > { %v2348_v15 = vadd.f32 %v3904_v20, %v2312_v35 }
 0x161   : > { %v1398_v44 = vpop.f32.mrf.mxu0  ;;  %v1527_v16 = vpop.f32.mrf.mxu1 }
 0x162   : > { %v2063_v7 = vpop.permute.xlu1 %2062  ;;  %v2380_v18 = vmax.f32 %v2348_v15, 0.0  ;;  %v1528_v8 = vadd.f32 %v1527_v16, %v1398_v44  ;;  %v1991_v19 = vpop.permute.xlu0 %1990 }
 0x163   : > { %v2127_v21 = vsel %vm741_vm5, %v2095_v41, %v2063_v7  ;;  %v2103_v23 = vsel %vm708_vm4, %v3713_v46, %v1991_v19 }
 0x164   : > { %2916 = vmatmul.msk.bf16.gmra.mxu2 %vm1332_vm6, %v2127_v21  ;;  %v2412_v47 = vpack.c.bf16 %v2380_v18, %v2380_v18  ;;  %v2277_v30 = vadd.f32 %v2207_v54, %v1528_v8  ;;  %v2135_v56 = vsel %vm741_vm5, %v2103_v23, %v2071_v29 }
 0x165   : > { %2920 = vmatmul.msk.bf16.gmra.mxu3 %vm1332_vm6, %v2135_v56 }
 0x166   : > { %2445 = vst.msk [vmem:[%s3920_s22 + $0x18] sm:$0xf] %vm2438_vm7, %v2412_v47  ;;  %v2313_v25 = vmul.f32 %v3897_v0, %v2277_v30 }
 0x167   : > { %v4021_v59 = vpop.f32.mrf.mxu3  ;;  %v618_v63 = vpop.permute.xlu2 %617 }
 0x168   : > { %v2349_v38 = vadd.f32 %v3904_v20, %v2313_v25  ;;  %v2210_v43 = vpop.f32.mrf.mxu2  ;;  %v732_v16 = vsel %vm708_vm4, %v3843_v28, %v618_v63 }
 0x16a   : > { %v1169_v49 = vpop.permute.xlu1 %1168  ;;  %v2381_v31 = vmax.f32 %v2349_v38, 0.0  ;;  %v616_v14 = vpop.permute.xlu0 %615 }
 0x16b   : > { %v730_v46 = vsel %vm708_vm4, %v3755_v62, %v616_v14  ;;  %v1530_v36 = vpop.f32.mrf.mxu1  ;;  %v1281_v9 = vsel %vm708_vm4, %v3751_v33, %v1169_v49  ;;  %v2105_v33 = vsel %vm708_vm4, %v3809_v17, %v1993_v61 }
 0x16c   : > { %v2413_v22 = vpack.c.bf16 %v2381_v31, %v2381_v31  ;;  %v763_v50 = vsel %vm741_vm5, %v730_v46, %v697_v27 }
 0x16d   : > { %2782 = vmatmul.msk.bf16.gmra.mxu1 %vm1332_vm6, %v763_v50 }
 0x16e   : > { %2446 = vst.msk [vmem:[%s3920_s22 + $0x1c] sm:$0xf] %vm2438_vm7, %v2413_v22 }
 0x16f   : > { %v4034_v15 = vpop.f32.mrf.mxu3  ;;  %v1251_v41 = vpop.permute.xlu2 %1250 }
 0x170   : > { %v2212_v29 = vpop.f32.mrf.mxu2 }
 0x171   : > { %v1401_v39 = vpop.f32.mrf.mxu0 }
 0x172   : > { %v1985_v37 = vpop.permute.xlu1 %1984  ;;  %v1531_v4 = vadd.f32 %v1530_v36, %v1401_v39  ;;  %v1249_v60 = vpop.permute.xlu0 %1248 }
 0x173   : > { %v1313_v62 = vsel %vm741_vm5, %v1281_v9, %v1249_v60  ;;  %v1532_v11 = vpop.f32.mrf.mxu1  ;;  %v2097_v34 = vsel %vm708_vm4, %v3781_v13, %v1985_v37 }
 0x174   : > { %v2278_v55 = vadd.f32 %v2210_v43, %v1531_v4  ;;  %2762 = vmatmul.msk.bf16.gmra.mxu0 %vm1332_vm6, %v1313_v62 }
 0x176   : > { %v2314_v3 = vmul.f32 %v3897_v0, %v2278_v55 }
 0x178   : > { %v2350_v51 = vadd.f32 %v3904_v20, %v2314_v3 }
 0x179   : > { %v1403_v24 = vpop.f32.mrf.mxu0 }
 0x17a   : > { %v2073_v57 = vpop.permute.xlu1 %2072  ;;  %v2382_v58 = vmax.f32 %v2350_v51, 0.0  ;;  %v1533_v10 = vadd.f32 %v1532_v11, %v1403_v24  ;;  %v2065_v2 = vpop.permute.xlu0 %2064 }
 0x17b   : > { %v2137_v1 = vsel %vm741_vm5, %v2105_v33, %v2073_v57  ;;  %v2129_v26 = vsel %vm741_vm5, %v2097_v34, %v2065_v2 }
 0x17c   : > { %2921 = vmatmul.msk.bf16.gmra.mxu3 %vm1332_vm6, %v2137_v1  ;;  %v2414_v6 = vpack.c.bf16 %v2382_v58, %v2382_v58  ;;  %v2279_v35 = vadd.f32 %v2212_v29, %v1533_v10  ;;  %2917 = vmatmul.msk.bf16.gmra.mxu2 %vm1332_vm6, %v2129_v26 }
 0x17e   : > { %2447 = vst.msk [vmem:[%s3920_s22 + $0x20] sm:$0xf] %vm2438_vm7, %v2414_v6  ;;  %v2315_v17 = vmul.f32 %v3897_v0, %v2279_v35 }
 0x17f   : > { %v2215_v7 = vpop.f32.mrf.mxu2  ;;  %v4050_v28 = vpop.f32.mrf.mxu3 }
 0x180   : > { %v2351_v13 = vadd.f32 %v3904_v20, %v2315_v17 }
 0x181   : > { %v1535_v44 = vpop.f32.mrf.mxu1 }
 0x182   : > { %v699_v18 = vpop.permute.xlu1 %698  ;;  %v2383_v8 = vmax.f32 %v2351_v13, 0.0  ;;  %v1171_v19 = vpop.permute.xlu0 %1170 }
 0x183   : > { %v1406_v21 = vpop.f32.mrf.mxu0  ;;  %v765_v27 = vsel %vm741_vm5, %v732_v16, %v699_v18  ;;  %v1283_v54 = vsel %vm708_vm4, %v3834_v5, %v1171_v19 }
 0x184   : > { %v1536_v23 = vadd.f32 %v1535_v44, %v1406_v21  ;;  %2783 = vmatmul.msk.bf16.gmra.mxu1 %vm1332_vm6, %v765_v27  ;;  %v2415_v47 = vpack.c.bf16 %v2383_v8, %v2383_v8  ;;  %v1315_v30 = vsel %vm741_vm5, %v1283_v54, %v1251_v41 }
 0x185   : > { %2763 = vmatmul.msk.bf16.gmra.mxu0 %vm1332_vm6, %v1315_v30 }
 0x186   : > { %v2280_v56 = vadd.f32 %v2215_v7, %v1536_v23  ;;  %2448 = vst.msk [vmem:[%s3920_s22 + $0x24] sm:$0xf] %vm2438_vm7, %v2415_v47 }
 0x187   : > { %v2217_v46 = vpop.f32.mrf.mxu2  ;;  %v4057_v43 = vpop.f32.mrf.mxu3 }
 0x188   : > { %v2316_v25 = vmul.f32 %v3897_v0, %v2280_v56  ;;  %v1571_v56 = vadd.f32 %v4021_v59, %v3915_v12  ;;  %v1573_v59 = vadd.f32 %v4034_v15, %v3930_v52 }
 0x189   : > { %v1537_v38 = vpop.f32.mrf.mxu1 }
 0x18a   : > { %v2352_v5 = vadd.f32 %v3904_v20, %v2316_v25 }
 0x18b   : > { %v1408_v49 = vpop.f32.mrf.mxu0 }
 0x18c   : > { %v2384_v31 = vmax.f32 %v2352_v5, 0.0  ;;  %v1538_v14 = vadd.f32 %v1537_v38, %v1408_v49 }
 0x18e   : > { %v2416_v22 = vpack.c.bf16 %v2384_v31, %v2384_v31  ;;  %v2281_v50 = vadd.f32 %v2217_v46, %v1538_v14 }
 0x190   : > { %2449 = vst.msk [vmem:[%s3920_s22 + $0x28] sm:$0xf] %vm2438_vm7, %v2416_v22  ;;  %v2317_v61 = vmul.f32 %v3897_v0, %v2281_v50  ;;  %v4062_v62 = vpop.f32.mrf.mxu3 }
 0x192   : > { %v2353_v36 = vadd.f32 %v3904_v20, %v2317_v61 }
 0x194   : > { %v2385_v39 = vmax.f32 %v2353_v36, 0.0 }
 0x196   : > { %v2417_v37 = vpack.c.bf16 %v2385_v39, %v2385_v39 }
 0x197   : > { %v2220_v4 = vpop.f32.mrf.mxu2 }
 0x198   : > { %2450 = vst.msk [vmem:[%s3920_s22 + $0x2c] sm:$0xf] %vm2438_vm7, %v2417_v37  ;;  %v4066_v58 = vpop.f32.mrf.mxu3 }
 0x199   : > { %v1411_v9 = vpop.f32.mrf.mxu0  ;;  %v1540_v60 = vpop.f32.mrf.mxu1 }
 0x19a   : > { %v1541_v55 = vadd.f32 %v1540_v60, %v1411_v9 }
 0x19c   : > { %v2282_v3 = vadd.f32 %v2220_v4, %v1541_v55 }
 0x19e   : > { %v2318_v63 = vmul.f32 %v3897_v0, %v2282_v3 }
 0x19f   : > { %v2222_v57 = vpop.f32.mrf.mxu2 }
 0x1a0   : > { %v2354_v29 = vadd.f32 %v3904_v20, %v2318_v63 }
 0x1a1   : > { %v1413_v51 = vpop.f32.mrf.mxu0  ;;  %v1542_v11 = vpop.f32.mrf.mxu1 }
 0x1a2   : > { %v2386_v33 = vmax.f32 %v2354_v29, 0.0  ;;  %v1543_v24 = vadd.f32 %v1542_v11, %v1413_v51 }
 0x1a4   : > { %v2418_v34 = vpack.c.bf16 %v2386_v33, %v2386_v33  ;;  %v2283_v10 = vadd.f32 %v2222_v57, %v1543_v24 }
 0x1a6   : > { %2451 = vst.msk [vmem:[%s3920_s22 + $0x30] sm:$0xf] %vm2438_vm7, %v2418_v34  ;;  %v2319_v2 = vmul.f32 %v3897_v0, %v2283_v10 }
 0x1a7   : > { %v4072_v35 = vpop.f32.mrf.mxu3 }
 0x1a8   : > { %v2355_v1 = vadd.f32 %v3904_v20, %v2319_v2  ;;  %v2225_v13 = vpop.f32.mrf.mxu2 }
 0x1aa   : > { %v2387_v26 = vmax.f32 %v2355_v1, 0.0  ;;  %v1545_v17 = vpop.f32.mrf.mxu1 }
 0x1ac   : > { %v2419_v6 = vpack.c.bf16 %v2387_v26, %v2387_v26 }
 0x1ae   : > { %2452 = vst.msk [vmem:[%s3920_s22 + $0x34] sm:$0xf] %vm2438_vm7, %v2419_v6 }
 0x1af   : > { %v4076_v7 = vpop.f32.mrf.mxu3 }
 0x1b0   : > { %v2227_v27 = vpop.f32.mrf.mxu2 }
 0x1b1   : > { %v1416_v44 = vpop.f32.mrf.mxu0 }
 0x1b2   : > { %v1546_v41 = vadd.f32 %v1545_v17, %v1416_v44  ;;  %v1547_v19 = vpop.f32.mrf.mxu1  ;;  %v1576_v17 = vadd.f32 %v4050_v28, %v3942_v40 }
 0x1b4   : > { %v2284_v16 = vadd.f32 %v2225_v13, %v1546_v41 }
 0x1b6   : > { %v2320_v18 = vmul.f32 %v3897_v0, %v2284_v16 }
 0x1b8   : > { %v2356_v8 = vadd.f32 %v3904_v20, %v2320_v18 }
 0x1b9   : > { %v1418_v21 = vpop.f32.mrf.mxu0 }
 0x1ba   : > { %v2388_v54 = vmax.f32 %v2356_v8, 0.0  ;;  %v1548_v23 = vadd.f32 %v1547_v19, %v1418_v21 }
 0x1bc   : > { %v2420_v47 = vpack.c.bf16 %v2388_v54, %v2388_v54  ;;  %v2285_v30 = vadd.f32 %v2227_v27, %v1548_v23  ;;  %v1578_v54 = vadd.f32 %v4057_v43, %v3960_v53 }
 0x1be   : > { %2453 = vst.msk [vmem:[%s3920_s22 + $0x38] sm:$0xf] %vm2438_vm7, %v2420_v47  ;;  %v2321_v25 = vmul.f32 %v3897_v0, %v2285_v30 }
 0x1bf   : > { %v2250_v38 = vpop.f32.mrf.mxu3  ;;  %v2230_v22 = vpop.f32.mrf.mxu2 }
 0x1c0   : > { %v2294_v5 = vadd.f32 %v2250_v38, %v1571_v56  ;;  %v2357_v49 = vadd.f32 %v3904_v20, %v2321_v25 }
 0x1c1   : > { %v1550_v31 = vpop.f32.mrf.mxu1 }
 0x1c2   : > { %v2330_v14 = vmul.f32 %v3897_v0, %v2294_v5  ;;  %v2389_v46 = vmax.f32 %v2357_v49, 0.0  ;;  %v1421_v50 = vpop.f32.mrf.mxu0 }
 0x1c3   : > { %v1551_v36 = vadd.f32 %v1550_v31, %v1421_v50 }
 0x1c4   : > { %v2366_v61 = vadd.f32 %v3904_v20, %v2330_v14  ;;  %v2421_v12 = vpack.c.bf16 %v2389_v46, %v2389_v46 }
 0x1c5   : > { %v2286_v37 = vadd.f32 %v2230_v22, %v1551_v36 }
 0x1c6   : > { %v2398_v39 = vmax.f32 %v2366_v61, 0.0  ;;  %2454 = vst.msk [vmem:[%s3920_s22 + $0x3c] sm:$0xf] %vm2438_vm7, %v2421_v12  ;;  %v1581_v61 = vadd.f32 %v4062_v62, %v3970_v42  ;;  %v1583_v42 = vadd.f32 %v4066_v58, %v3982_v32 }
 0x1c7   : > { %v2252_v9 = vpop.f32.mrf.mxu3  ;;  %v2322_v60 = vmul.f32 %v3897_v0, %v2286_v37  ;;  %v2232_v33 = vpop.f32.mrf.mxu2 }
 0x1c8   : > { %v2430_v4 = vpack.c.bf16 %v2398_v39, %v2398_v39  ;;  %v2295_v55 = vadd.f32 %v2252_v9, %v1573_v59 }
 0x1c9   : > { %v1552_v3 = vpop.f32.mrf.mxu1  ;;  %v2358_v63 = vadd.f32 %v3904_v20, %v2322_v60 }
 0x1ca   : > { %2463 = vst.msk [vmem:[%s3920_s22 + $0x60] sm:$0xf] %vm2438_vm7, %v2430_v4  ;;  %v2331_v29 = vmul.f32 %v3897_v0, %v2295_v55  ;;  %v1423_v51 = vpop.f32.mrf.mxu0 }
 0x1cb   : > { %v2390_v52 = vmax.f32 %v2358_v63, 0.0  ;;  %v1553_v11 = vadd.f32 %v1552_v3, %v1423_v51 }
 0x1cc   : > { %v2367_v15 = vadd.f32 %v3904_v20, %v2331_v29 }
 0x1cd   : > { %v2422_v24 = vpack.c.bf16 %v2390_v52, %v2390_v52  ;;  %v2287_v34 = vadd.f32 %v2232_v33, %v1553_v11 }
 0x1ce   : > { %v2399_v57 = vmax.f32 %v2367_v15, 0.0 }
 0x1cf   : > { %2455 = vst.msk [vmem:[%s3920_s22 + $0x40] sm:$0xf] %vm2438_vm7, %v2422_v24  ;;  %v2323_v2 = vmul.f32 %v3897_v0, %v2287_v34 }
 0x1d0   : > { %v2431_v10 = vpack.c.bf16 %v2399_v57, %v2399_v57  ;;  %v2235_v16 = vpop.f32.mrf.mxu2 }
 0x1d1   : > { %v2359_v1 = vadd.f32 %v3904_v20, %v2323_v2 }
 0x1d2   : > { %2464 = vst.msk [vmem:[%s3920_s22 + $0x64] sm:$0xf] %vm2438_vm7, %v2431_v10 }
 0x1d3   : > { %v2391_v26 = vmax.f32 %v2359_v1, 0.0 }
 0x1d5   : > { %v2423_v6 = vpack.c.bf16 %v2391_v26, %v2391_v26 }
 0x1d7   : > { %2456 = vst.msk [vmem:[%s3920_s22 + $0x44] sm:$0xf] %vm2438_vm7, %v2423_v6  ;;  %v2255_v13 = vpop.f32.mrf.mxu3 }
 0x1d8   : > { %v2296_v44 = vadd.f32 %v2255_v13, %v1576_v17  ;;  %v2237_v14 = vpop.f32.mrf.mxu2 }
 0x1d9   : > { %v1426_v41 = vpop.f32.mrf.mxu0  ;;  %v1555_v18 = vpop.f32.mrf.mxu1 }
 0x1da   : > { %v2332_v8 = vmul.f32 %v3897_v0, %v2296_v44  ;;  %v1556_v19 = vadd.f32 %v1555_v18, %v1426_v41  ;;  %v1586_v44 = vadd.f32 %v4072_v35, %v3995_v48  ;;  %v1588_v35 = vadd.f32 %v4076_v7, %v4012_v45 }
 0x1dc   : > { %v2368_v21 = vadd.f32 %v3904_v20, %v2332_v8  ;;  %v2288_v27 = vadd.f32 %v2235_v16, %v1556_v19 }
 0x1de   : > { %v2400_v23 = vmax.f32 %v2368_v21, 0.0  ;;  %v2324_v40 = vmul.f32 %v3897_v0, %v2288_v27 }
 0x1df   : > { %v2257_v28 = vpop.f32.mrf.mxu3 }
 0x1e0   : > { %v2432_v47 = vpack.c.bf16 %v2400_v23, %v2400_v23  ;;  %v2360_v30 = vadd.f32 %v3904_v20, %v2324_v40  ;;  %v2297_v56 = vadd.f32 %v2257_v28, %v1578_v54 }
 0x1e1   : > { %v1428_v25 = vpop.f32.mrf.mxu0  ;;  %v1557_v38 = vpop.f32.mrf.mxu1 }
 0x1e2   : > { %2465 = vst.msk [vmem:[%s3920_s22 + $0x68] sm:$0xf] %vm2438_vm7, %v2432_v47  ;;  %v2392_v5 = vmax.f32 %v2360_v30, 0.0  ;;  %v2333_v49 = vmul.f32 %v3897_v0, %v2297_v56  ;;  %v1558_v31 = vadd.f32 %v1557_v38, %v1428_v25 }
 0x1e4   : > { %v2424_v53 = vpack.c.bf16 %v2392_v5, %v2392_v5  ;;  %v2369_v43 = vadd.f32 %v3904_v20, %v2333_v49  ;;  %v2289_v46 = vadd.f32 %v2237_v14, %v1558_v31 }
 0x1e6   : > { %2457 = vst.msk [vmem:[%s3920_s22 + $0x48] sm:$0xf] %vm2438_vm7, %v2424_v53  ;;  %v2401_v22 = vmax.f32 %v2369_v43, 0.0  ;;  %v2325_v50 = vmul.f32 %v3897_v0, %v2289_v46 }
 0x1e7   : > { %v2240_v3 = vpop.f32.mrf.mxu2 }
 0x1e8   : > { %v2433_v36 = vpack.c.bf16 %v2401_v22, %v2401_v22  ;;  %v2361_v12 = vadd.f32 %v3904_v20, %v2325_v50  ;;  %v2260_v59 = vpop.f32.mrf.mxu3 }
 0x1e9   : > { %v2298_v39 = vadd.f32 %v2260_v59, %v1581_v61 }
 0x1ea   : > { %2466 = vst.msk [vmem:[%s3920_s22 + $0x6c] sm:$0xf] %vm2438_vm7, %v2433_v36  ;;  %v2393_v37 = vmax.f32 %v2361_v12, 0.0  ;;  %v1560_v55 = vpop.f32.mrf.mxu1 }
 0x1eb   : > { %v2334_v9 = vmul.f32 %v3897_v0, %v2298_v39 }
 0x1ec   : > { %v2425_v4 = vpack.c.bf16 %v2393_v37, %v2393_v37 }
 0x1ed   : > { %v2370_v60 = vadd.f32 %v3904_v20, %v2334_v9 }
 0x1ee   : > { %2458 = vst.msk [vmem:[%s3920_s22 + $0x4c] sm:$0xf] %vm2438_vm7, %v2425_v4 }
 0x1ef   : > { %v2402_v62 = vmax.f32 %v2370_v60, 0.0  ;;  %v2242_v1 = vpop.f32.mrf.mxu2 }
 0x1f0   : > { %v2262_v63 = vpop.f32.mrf.mxu3 }
 0x1f1   : > { %v2434_v29 = vpack.c.bf16 %v2402_v62, %v2402_v62  ;;  %v2299_v51 = vadd.f32 %v2262_v63, %v1583_v42  ;;  %v1431_v52 = vpop.f32.mrf.mxu0 }
 0x1f2   : > { %v1561_v15 = vadd.f32 %v1560_v55, %v1431_v52  ;;  %v1562_v58 = vpop.f32.mrf.mxu1 }
 0x1f3   : > { %2467 = vst.msk [vmem:[%s3920_s22 + $0x70] sm:$0xf] %vm2438_vm7, %v2434_v29  ;;  %v2335_v11 = vmul.f32 %v3897_v0, %v2299_v51 }
 0x1f4   : > { %v2290_v33 = vadd.f32 %v2240_v3, %v1561_v15 }
 0x1f5   : > { %v2371_v24 = vadd.f32 %v3904_v20, %v2335_v11 }
 0x1f6   : > { %v2326_v57 = vmul.f32 %v3897_v0, %v2290_v33 }
 0x1f7   : > { %v2403_v34 = vmax.f32 %v2371_v24, 0.0 }
 0x1f8   : > { %v2362_v32 = vadd.f32 %v3904_v20, %v2326_v57 }
 0x1f9   : > { %v2435_v10 = vpack.c.bf16 %v2403_v34, %v2403_v34  ;;  %v1433_v2 = vpop.f32.mrf.mxu0 }
 0x1fa   : > { %v2394_v26 = vmax.f32 %v2362_v32, 0.0  ;;  %v1563_v6 = vadd.f32 %v1562_v58, %v1433_v2 }
 0x1fb   : > { %2468 = vst.msk [vmem:[%s3920_s22 + $0x74] sm:$0xf] %vm2438_vm7, %v2435_v10 }
 0x1fc   : > { %v2426_v17 = vpack.c.bf16 %v2394_v26, %v2394_v26  ;;  %v2291_v13 = vadd.f32 %v2242_v1, %v1563_v6 }
 0x1fe   : > { %2459 = vst.msk [vmem:[%s3920_s22 + $0x50] sm:$0xf] %vm2438_vm7, %v2426_v17  ;;  %v2327_v41 = vmul.f32 %v3897_v0, %v2291_v13 }
 0x1ff   : > { %v2265_v16 = vpop.f32.mrf.mxu3  ;;  %v2245_v54 = vpop.f32.mrf.mxu2 }
 0x200   : > { %v2300_v18 = vadd.f32 %v2265_v16, %v1586_v44  ;;  %v2363_v8 = vadd.f32 %v3904_v20, %v2327_v41 }
 0x201   : > { %v1565_v19 = vpop.f32.mrf.mxu1 }
 0x202   : > { %v2336_v21 = vmul.f32 %v3897_v0, %v2300_v18  ;;  %v2395_v27 = vmax.f32 %v2363_v8, 0.0  ;;  %v1436_v23 = vpop.f32.mrf.mxu0 }
 0x203   : > { %v1566_v28 = vadd.f32 %v1565_v19, %v1436_v23 }
 0x204   : > { %v2372_v40 = vadd.f32 %v3904_v20, %v2336_v21  ;;  %v2427_v48 = vpack.c.bf16 %v2395_v27, %v2395_v27 }
 0x205   : > { %v2292_v30 = vadd.f32 %v2245_v54, %v1566_v28 }
 0x206   : > { %v2404_v47 = vmax.f32 %v2372_v40, 0.0  ;;  %2460 = vst.msk [vmem:[%s3920_s22 + $0x54] sm:$0xf] %vm2438_vm7, %v2427_v48 }
 0x207   : > { %v2267_v56 = vpop.f32.mrf.mxu3  ;;  %v2328_v38 = vmul.f32 %v3897_v0, %v2292_v30  ;;  %v2247_v46 = vpop.f32.mrf.mxu2 }
 0x208   : > { %v2436_v25 = vpack.c.bf16 %v2404_v47, %v2404_v47  ;;  %v2301_v5 = vadd.f32 %v2267_v56, %v1588_v35 }
 0x209   : > { %v1567_v49 = vpop.f32.mrf.mxu1  ;;  %v2364_v31 = vadd.f32 %v3904_v20, %v2328_v38 }
 0x20a   : > { %2469 = vst.msk [vmem:[%s3920_s22 + $0x78] sm:$0xf] %vm2438_vm7, %v2436_v25  ;;  %v2337_v14 = vmul.f32 %v3897_v0, %v2301_v5  ;;  %v1438_v45 = vpop.f32.mrf.mxu0 }
 0x20b   : > { %v2396_v7 = vmax.f32 %v2364_v31, 0.0  ;;  %v1568_v43 = vadd.f32 %v1567_v49, %v1438_v45 }
 0x20c   : > { %v2373_v53 = vadd.f32 %v3904_v20, %v2337_v14 }
 0x20d   : > { %v2428_v22 = vpack.c.bf16 %v2396_v7, %v2396_v7  ;;  %v2293_v61 = vadd.f32 %v2247_v46, %v1568_v43 }
 0x20e   : > { %v2405_v50 = vmax.f32 %v2373_v53, 0.0 }
 0x20f   : > { %2461 = vst.msk [vmem:[%s3920_s22 + $0x58] sm:$0xf] %vm2438_vm7, %v2428_v22  ;;  %v2329_v12 = vmul.f32 %v3897_v0, %v2293_v61 }
 0x210   : > { %v2437_v36 = vpack.c.bf16 %v2405_v50, %v2405_v50 }
 0x211   : > { %v2365_v59 = vadd.f32 %v3904_v20, %v2329_v12 }
 0x212   : > { %2470 = vst.msk [vmem:[%s3920_s22 + $0x7c] sm:$0xf] %vm2438_vm7, %v2437_v36 }
 0x213   : > { %v2397_v39 = vmax.f32 %v2365_v59, 0.0 }
 0x215   : > { %v2429_v37 = vpack.c.bf16 %v2397_v39, %v2397_v39 }
 0x217   : > { %2462 = vst.msk [vmem:[%s3920_s22 + $0x5c] sm:$0xf] %vm2438_vm7, %v2429_v37 }
 0x218 PF: > { %s14_s17 = sadd.s32 1, %s3040_s17   ;;  %s4180_s15 = smov %s3036_s16 }
 0x219   : > { %p11_p5 = scmp.ge.s32.totalorder %s14_s17, 4   ;;  %s4181_s16 = smov %s4183_s18 }
 0x21b   :  { %13 = sbr.rel (!%p11_p5) target bundleno = 2 (0x2), region = 71 }

</bundles_post_ra>
